<compile_context>
chip_gen: v7x
topology: tpu7x:2x2x1
jax: 0.10.0
libtpu: 0.0.40
codegen_flags: <defaults>
</compile_context>

<pallas_src>
import functools

import jax
import jax.numpy as jnp
import numpy as np
from jax import lax
from jax.experimental import pallas as pl
from jax.experimental.pallas import tpu as pltpu

_TEMPERATURE = 0.07
_INV_TEMP = 1.0 / _TEMPERATURE
_EPS_NORM = 1e-12      # matches torch F.normalize eps
_EPS_NCE = 1e-6
_TILE_MAX = 512        # row/col tile of the N x N similarity


def _round_up(x, m):
    return ((x + m - 1) // m) * m


def _prep_kernel(pred_ref, tgt_ref, gt_ref, q_ref, k_ref, png_ref, pnv_ref,
                 vneg_ref, *, d_real):
    """Per row tile: validity masks, masked row norms, bf16 normalized q/k."""
    gt = gt_ref[...]                               # (tq, 1) f32, 1.0 on GT rows
    pred_raw = pred_ref[...]                       # (tq, D) f32 (-inf on padding rows)
    tgt_raw = tgt_ref[...]                         # (tq, D) f32

    # valid row <=> no +-inf lane (padding rows — incl. wrapper row-pad — are -inf).
    # TODO(synk): NaN-padded rows would still count as valid negatives (spec uses isinf).
    inf_lane = jnp.where(jnp.isinf(pred_raw), 1.0, 0.0)
    invalid = jnp.max(inf_lane, axis=-1, keepdims=True)          # (tq,1) in {0,1}
    vneg = (1.0 - gt) * (1.0 - invalid)                          # valid negative rows

    keep = (gt + vneg) > 0.0
    pred = jnp.where(keep, pred_raw, 0.0)          # zero padding rows (never poison math)
    tgt = jnp.where(gt > 0.0, tgt_raw, 0.0)        # only GT targets enter InfoNCE

    pn = jnp.sqrt(jnp.sum(pred * pred, axis=-1, keepdims=True))  # (tq,1)
    tn = jnp.sqrt(jnp.sum(tgt * tgt, axis=-1, keepdims=True))
    png_ref[...] = pn * gt       # numerator of  -mean(||pred_gt||)
    pnv_ref[...] = pn * vneg     # numerator of   mean(||pred_valid_neg||)
    vneg_ref[...] = vneg         # count of valid negatives (epilogue mean)

    # Fold 1/temperature and reciprocal norms into per-row scales.
    q_scale = _INV_TEMP / jnp.maximum(pn, _EPS_NORM)
    k_scale = 1.0 / jnp.maximum(tn, _EPS_NORM)
    qv = (pred * q_scale).astype(jnp.bfloat16)
    kv = (tgt * k_scale).astype(jnp.bfloat16)

    d_pad = q_ref.shape[-1]
    if d_pad == d_real:
        q_ref[...] = qv
        k_ref[...] = kv
    else:
        # Lane padding happens here (masked partial store) instead of an extra
        # d_pad-wide f32 copy pass in the wrapper.
        q_ref[...] = jnp.zeros_like(q_ref)
        k_ref[...] = jnp.zeros_like(k_ref)
        q_ref[:, :d_real] = qv
        k_ref[:, :d_real] = kv


def _nce_kernel(cnt_ref, q_ref, k_ref, labr_ref, labc_ref, colgt_ref, gtr_ref,
                o_ref, num_acc, den_acc):
    """Flash-style InfoNCE with lane-dense accumulators and dead-tile skipping."""
    i = pl.program_id(0)
    j = pl.program_id(1)

    @pl.when(j == 0)
    def _():
        num_acc[...] = jnp.zeros_like(num_acc)
        den_acc[...] = jnp.zeros_like(den_acc)

    # Only tiles with at least one GT row and one GT column contribute.
    @pl.when(jnp.logical_and(cnt_ref[i] > 0, cnt_ref[j] > 0))
    def _():
        # bf16 x bf16 contraction on the lane axis, f32 accumulation on MXU.
        sim = lax.dot_general(q_ref[...], k_ref[...], (((1,), (1,)), ((), ())),
                              preferred_element_type=jnp.float32)   # (tq, tk)
        colgt = colgt_ref[...]              # (1, tk): 1.0 for GT columns else 0
        e = jnp.exp(sim) * colgt            # non-GT columns contribute nothing
        same = labr_ref[...] == labc_ref[...]          # (tq,1) int32 == (1,tk) int32
        masked = jnp.where(same, e, 0.0)

        # Lane-dense accumulation (VPU adds); one cross-lane reduce per row tile.
        tk = e.shape[-1]
        for blk in range(tk // 128):
            lo = blk * 128
            num_acc[...] += masked[:, lo:lo + 128]
            den_acc[...] += e[:, lo:lo + 128]

    @pl.when(j == pl.num_programs(1) - 1)
    def _():
        num = jnp.sum(num_acc[...], axis=-1, keepdims=True)
        den = jnp.sum(den_acc[...], axis=-1, keepdims=True)
        loss = -jnp.log((num + _EPS_NCE) / (den + _EPS_NCE))
        o_ref[...] = loss * gtr_ref[...]               # zero out non-GT rows


def stage1_criterion(pred, target, gt_label_tensor,
                     align_weight=1.0, pos_mag_weight=1.0, neg_mag_weight=1.0):
    """pred/target: (B, Q, D) f32; gt_label_tensor: (B, Q) int32, -1 for non-GT."""
    B, Q, D = pred.shape
    N = B * Q
    tile = min(_TILE_MAX, max(128, _round_up(N, 128)))
    n_pad = _round_up(N, tile)
    d_pad = _round_up(D, 128)      # lane-aligned contraction width (no bias lane)
    n_i = n_pad // tile
    n_j = n_pad // tile

    pred2 = pred.reshape(N, D).astype(jnp.float32)
    tgt2 = target.reshape(N, D).astype(jnp.float32)
    labels = gt_label_tensor.reshape(N).astype(jnp.int32)

    gt_mask = labels > -1
    gt_f = gt_mask.astype(jnp.float32)

    # Row-pad only (the lane padding happens inside pass 1).  Padding rows get
    # -inf so the in-kernel validity check excludes them, like real padding.
    pred_rows = jnp.full((n_pad, D), -jnp.inf, jnp.float32).at[:N, :].set(pred2)
    tgt_rows = jnp.zeros((n_pad, D), jnp.float32).at[:N, :].set(tgt2)
    gt_col = jnp.zeros((n_pad, 1), jnp.float32).at[:N, 0].set(gt_f)
    lab_pad = jnp.full((n_pad,), -1, jnp.int32).at[:N].set(labels)
    lab_row = lab_pad.reshape(n_pad, 1)
    lab_col = lab_pad.reshape(1, n_pad)
    colgt = gt_col.reshape(1, n_pad)

    # Per-tile GT counts (rows == cols tiling) for dead-tile skipping in pass 2.
    tile_cnt = jnp.sum(gt_col.reshape(n_i, tile), axis=-1).astype(jnp.int32)

    # --- pass 1: masks / magnitude numerators / bf16 normalized q,k -----------
    q_aug, k_aug, pn_gt, pn_vneg, vneg_ind = pl.pallas_call(
        functools.partial(_prep_kernel, d_real=D),
        out_shape=(jax.ShapeDtypeStruct((n_pad, d_pad), jnp.bfloat16),
                   jax.ShapeDtypeStruct((n_pad, d_pad), jnp.bfloat16),
                   jax.ShapeDtypeStruct((n_pad, 1), jnp.float32),
                   jax.ShapeDtypeStruct((n_pad, 1), jnp.float32),
                   jax.ShapeDtypeStruct((n_pad, 1), jnp.float32)),
        grid=(n_i,),
        in_specs=[pl.BlockSpec((tile, D), lambda i: (i, 0)),
                  pl.BlockSpec((tile, D), lambda i: (i, 0)),
                  pl.BlockSpec((tile, 1), lambda i: (i, 0))],
        out_specs=(pl.BlockSpec((tile, d_pad), lambda i: (i, 0)),
                   pl.BlockSpec((tile, d_pad), lambda i: (i, 0)),
                   pl.BlockSpec((tile, 1), lambda i: (i, 0)),
                   pl.BlockSpec((tile, 1), lambda i: (i, 0)),
                   pl.BlockSpec((tile, 1), lambda i: (i, 0))),
        compiler_params=pltpu.CompilerParams(dimension_semantics=("parallel",)),
    )(pred_rows, tgt_rows, gt_col)

    # --- pass 2: tiled InfoNCE (never materializes the N x N similarity) ------
    cost = pl.CostEstimate(
        flops=2 * n_pad * n_pad * d_pad + 6 * n_pad * n_pad,
        transcendentals=n_pad * n_pad,
        bytes_accessed=2 * n_pad * d_pad * (1 + n_i) + 4 * 8 * n_pad)

    align_rows = pl.pallas_call(
        _nce_kernel,
        out_shape=jax.ShapeDtypeStruct((n_pad, 1), jnp.float32),
        grid_spec=pltpu.PrefetchScalarGridSpec(
            num_scalar_prefetch=1,
            grid=(n_i, n_j),
            in_specs=[pl.BlockSpec((tile, d_pad), lambda i, j, cnt: (i, 0)),  # q rows
                      pl.BlockSpec((tile, d_pad), lambda i, j, cnt: (j, 0)),  # k cols
                      pl.BlockSpec((tile, 1), lambda i, j, cnt: (i, 0)),      # lab_row
                      pl.BlockSpec((1, tile), lambda i, j, cnt: (0, j)),      # lab_col
                      pl.BlockSpec((1, tile), lambda i, j, cnt: (0, j)),      # col GT
                      pl.BlockSpec((tile, 1), lambda i, j, cnt: (i, 0))],     # row GT
            out_specs=pl.BlockSpec((tile, 1), lambda i, j, cnt: (i, 0)),
            scratch_shapes=[pltpu.VMEM((tile, 128), jnp.float32),
                            pltpu.VMEM((tile, 128), jnp.float32)]),
        compiler_params=pltpu.CompilerParams(
            dimension_semantics=("parallel", "arbitrary")),
        cost_estimate=cost,
    )(tile_cnt, q_aug, k_aug, lab_row, lab_col, colgt, gt_col)

    # --- O(N)/O(1) epilogue: masked means + weights + empty-set guards --------
    n_gt = jnp.sum(gt_f)
    n_vneg = jnp.sum(vneg_ind)
    has_gt = n_gt > 0.0

    align = jnp.where(has_gt, jnp.sum(align_rows) / jnp.maximum(n_gt, 1.0), 0.0)
    pos = jnp.where(has_gt, -jnp.sum(pn_gt) / jnp.maximum(n_gt, 1.0), 0.0)
    neg = jnp.where(jnp.logical_and(has_gt, n_vneg > 0.0),
                    jnp.sum(pn_vneg) / jnp.maximum(n_vneg, 1.0), 0.0)

    return {
        'align_loss': align * align_weight,
        'pos_magnitude_loss': pos * pos_mag_weight,
        'neg_magnitude_loss': neg * neg_mag_weight,
    }


def _numpy_reference(pred, target, labels_bq):
    pred = np.asarray(pred, dtype=np.float64)
    target = np.asarray(target, dtype=np.float64)
    labels = np.asarray(labels_bq)
    gt_mask = labels > -1
    valid = ~np.isinf(pred).any(-1)
    vneg = (~gt_mask) & valid

    pred_gt = pred[gt_mask]
    tgt_gt = target[gt_mask]
    lab = labels[gt_mask]

    qn = pred_gt / np.maximum(np.linalg.norm(pred_gt, axis=-1, keepdims=True), _EPS_NORM)
    kn = tgt_gt / np.maximum(np.linalg.norm(tgt_gt, axis=-1, keepdims=True), _EPS_NORM)
    sim = qn @ kn.T / _TEMPERATURE
    lm = (lab[:, None] == lab[None, :]).astype(np.float64)
    se = np.exp(sim)
    num = (se * lm).sum(1)
    den = se.sum(1)
    align = float((-np.log((num + _EPS_NCE) / (den + _EPS_NCE))).mean())
    pos = float(-np.linalg.norm(pred_gt, axis=-1).mean())
    neg = float(np.linalg.norm(pred[vneg], axis=-1).mean()) if vneg.any() else 0.0
    return align, pos, neg


if __name__ == "__main__":
    B, Q, D = 2, 8, 32
    key = jax.random.PRNGKey(0)
    k_pred, k_tgt = jax.random.split(key)

    pred = jax.random.normal(k_pred, (B, Q, D), dtype=jnp.float32)
    target = jax.random.normal(k_tgt, (B, Q, D), dtype=jnp.float32)

    # GT labels (per-batch, -1 for non-GT); padding rows get -inf predictions.
    gt_label_tensor = jnp.array(
        [[3, 5, 3, -1, -1, -1, -1, -1],
         [7, 3, -1, -1, -1, -1, -1, -1]], dtype=jnp.int32)
    pad_mask = jnp.array(
        [[0, 0, 0, 0, 0, 0, 1, 1],
         [0, 0, 0, 0, 0, 1, 1, 1]], dtype=bool)
    pred = jnp.where(pad_mask[:, :, None], -jnp.inf, pred)
    # targets are zero for non-GT slots (per docstring); only GT slots matter.
    target = jnp.where((gt_label_tensor > -1)[:, :, None], target, 0.0)

    out = stage1_criterion(pred, target, gt_label_tensor)
    jax.block_until_ready(out)

    ref_align, ref_pos, ref_neg = _numpy_reference(pred, target, gt_label_tensor)
    # align goes through bf16 q/k on the MXU -> looser tolerance; magnitude
    # losses stay in f32 -> tight tolerance.
    np.testing.assert_allclose(float(out['align_loss']), ref_align, rtol=5e-2, atol=5e-2)
    np.testing.assert_allclose(float(out['pos_magnitude_loss']), ref_pos, rtol=1e-3, atol=1e-4)
    np.testing.assert_allclose(float(out['neg_magnitude_loss']), ref_neg, rtol=1e-3, atol=1e-4)

    print("KERNEL_OK")
</pallas_src>

<mosaic_0001>
module attributes {stable_mosaic.version = 11 : i64} {
  func.func @_prep_kernel(%arg0: i32, %arg1: memref<128x32xf32, #tpu.memory_space<vmem>>, %arg2: memref<128x32xf32, #tpu.memory_space<vmem>>, %arg3: memref<128x1xf32, #tpu.memory_space<vmem>>, %arg4: memref<128x128xbf16, #tpu.memory_space<vmem>>, %arg5: memref<128x128xbf16, #tpu.memory_space<vmem>>, %arg6: memref<128x1xf32, #tpu.memory_space<vmem>>, %arg7: memref<128x1xf32, #tpu.memory_space<vmem>>, %arg8: memref<128x1xf32, #tpu.memory_space<vmem>>) attributes {dimension_semantics = [#tpu.dimension_semantics<parallel>], iteration_bounds = array<i64: 1>, scalar_prefetch = 0 : i64, scratch_operands = 0 : i64, tpu.core_type = #tpu.core_type<tc>, window_params = [{transform_indices = @transform_0, window_bounds = array<i64: 128, 32>}, {transform_indices = @transform_1, window_bounds = array<i64: 128, 32>}, {transform_indices = @transform_2, window_bounds = array<i64: 128, 1>}, {transform_indices = @transform_3, window_bounds = array<i64: 128, 128>}, {transform_indices = @transform_4, window_bounds = array<i64: 128, 128>}, {transform_indices = @transform_5, window_bounds = array<i64: 128, 1>}, {transform_indices = @transform_6, window_bounds = array<i64: 128, 1>}, {transform_indices = @transform_7, window_bounds = array<i64: 128, 1>}]} {
    %c0 = arith.constant 0 : index
    %c0_0 = arith.constant 0 : index
    %0 = vector.load %arg3[%c0, %c0_0] : memref<128x1xf32, #tpu.memory_space<vmem>>, vector<128x1xf32>
    %c0_1 = arith.constant 0 : index
    %c0_2 = arith.constant 0 : index
    %1 = vector.load %arg1[%c0_1, %c0_2] : memref<128x32xf32, #tpu.memory_space<vmem>>, vector<128x32xf32>
    %c0_3 = arith.constant 0 : index
    %c0_4 = arith.constant 0 : index
    %2 = vector.load %arg2[%c0_3, %c0_4] : memref<128x32xf32, #tpu.memory_space<vmem>>, vector<128x32xf32>
    %3 = math.absf %1 : vector<128x32xf32>
    %cst = arith.constant 0x7F800000 : f32
    %4 = vector.broadcast %cst : f32 to vector<128x32xf32>
    %5 = arith.cmpf oeq, %3, %4 : vector<128x32xf32>
    %cst_5 = arith.constant 1.000000e+00 : f32
    %cst_6 = arith.constant 0.000000e+00 : f32
    %6 = vector.broadcast %cst_5 : f32 to vector<128x32xf32>
    %7 = vector.broadcast %cst_6 : f32 to vector<128x32xf32>
    %8 = arith.select %5, %6, %7 : vector<128x32xi1>, vector<128x32xf32>
    %cst_7 = arith.constant dense<0xFF800000> : vector<128xf32>
    %9 = vector.multi_reduction <maximumf>, %8, %cst_7 [1] : vector<128x32xf32> to vector<128xf32>
    %10 = vector.shape_cast %9 : vector<128xf32> to vector<128x1xf32>
    %cst_8 = arith.constant 1.000000e+00 : f32
    %11 = vector.broadcast %cst_8 : f32 to vector<128x1xf32>
    %12 = arith.subf %11, %0 : vector<128x1xf32>
    %cst_9 = arith.constant 1.000000e+00 : f32
    %13 = vector.broadcast %cst_9 : f32 to vector<128x1xf32>
    %14 = arith.subf %13, %10 : vector<128x1xf32>
    %15 = arith.mulf %12, %14 : vector<128x1xf32>
    %16 = arith.addf %0, %15 : vector<128x1xf32>
    %cst_10 = arith.constant 0.000000e+00 : f32
    %17 = vector.broadcast %cst_10 : f32 to vector<128x1xf32>
    %18 = arith.cmpf ogt, %16, %17 : vector<128x1xf32>
    %cst_11 = arith.constant 0.000000e+00 : f32
    %19 = vector.shape_cast %18 : vector<128x1xi1> to vector<128x1xi1>
    %20 = vector.broadcast %19 : vector<128x1xi1> to vector<128x32xi1>
    %21 = vector.broadcast %cst_11 : f32 to vector<128x32xf32>
    %22 = arith.select %20, %1, %21 : vector<128x32xi1>, vector<128x32xf32>
    %cst_12 = arith.constant 0.000000e+00 : f32
    %23 = vector.broadcast %cst_12 : f32 to vector<128x1xf32>
    %24 = arith.cmpf ogt, %0, %23 : vector<128x1xf32>
    %cst_13 = arith.constant 0.000000e+00 : f32
    %25 = vector.shape_cast %24 : vector<128x1xi1> to vector<128x1xi1>
    %26 = vector.broadcast %25 : vector<128x1xi1> to vector<128x32xi1>
    %27 = vector.broadcast %cst_13 : f32 to vector<128x32xf32>
    %28 = arith.select %26, %2, %27 : vector<128x32xi1>, vector<128x32xf32>
    %29 = arith.mulf %22, %22 : vector<128x32xf32>
    %cst_14 = arith.constant dense<0.000000e+00> : vector<128xf32>
    %30 = vector.multi_reduction <add>, %29, %cst_14 [1] : vector<128x32xf32> to vector<128xf32>
    %31 = vector.shape_cast %30 : vector<128xf32> to vector<128x1xf32>
    %32 = math.sqrt %31 : vector<128x1xf32>
    %33 = arith.mulf %28, %28 : vector<128x32xf32>
    %cst_15 = arith.constant dense<0.000000e+00> : vector<128xf32>
    %34 = vector.multi_reduction <add>, %33, %cst_15 [1] : vector<128x32xf32> to vector<128xf32>
    %35 = vector.shape_cast %34 : vector<128xf32> to vector<128x1xf32>
    %36 = math.sqrt %35 : vector<128x1xf32>
    %37 = arith.mulf %32, %0 : vector<128x1xf32>
    %c0_16 = arith.constant 0 : index
    %c0_17 = arith.constant 0 : index
    %38 = vector.load %arg6[%c0_16, %c0_17] : memref<128x1xf32, #tpu.memory_space<vmem>>, vector<128x1xf32>
    tpu.vector_store %arg6[%c0_16, %c0_17], %37 {strides = array<i32>} : memref<128x1xf32, #tpu.memory_space<vmem>>, vector<128x1xf32>,
    %39 = arith.mulf %32, %15 : vector<128x1xf32>
    %c0_18 = arith.constant 0 : index
    %c0_19 = arith.constant 0 : index
    %40 = vector.load %arg7[%c0_18, %c0_19] : memref<128x1xf32, #tpu.memory_space<vmem>>, vector<128x1xf32>
    tpu.vector_store %arg7[%c0_18, %c0_19], %39 {strides = array<i32>} : memref<128x1xf32, #tpu.memory_space<vmem>>, vector<128x1xf32>,
    %c0_20 = arith.constant 0 : index
    %c0_21 = arith.constant 0 : index
    %41 = vector.load %arg8[%c0_20, %c0_21] : memref<128x1xf32, #tpu.memory_space<vmem>>, vector<128x1xf32>
    tpu.vector_store %arg8[%c0_20, %c0_21], %15 {strides = array<i32>} : memref<128x1xf32, #tpu.memory_space<vmem>>, vector<128x1xf32>,
    %cst_22 = arith.constant 9.99999996E-13 : f32
    %42 = vector.broadcast %cst_22 : f32 to vector<128x1xf32>
    %43 = arith.maximumf %32, %42 : vector<128x1xf32>
    %cst_23 = arith.constant 14.2857141 : f32
    %44 = vector.broadcast %cst_23 : f32 to vector<128x1xf32>
    %45 = arith.divf %44, %43 : vector<128x1xf32>
    %cst_24 = arith.constant 9.99999996E-13 : f32
    %46 = vector.broadcast %cst_24 : f32 to vector<128x1xf32>
    %47 = arith.maximumf %36, %46 : vector<128x1xf32>
    %cst_25 = arith.constant 1.000000e+00 : f32
    %48 = vector.broadcast %cst_25 : f32 to vector<128x1xf32>
    %49 = arith.divf %48, %47 : vector<128x1xf32>
    %50 = vector.broadcast %45 : vector<128x1xf32> to vector<128x32xf32>
    %51 = arith.mulf %22, %50 : vector<128x32xf32>
    %52 = arith.truncf %51 : vector<128x32xf32> to vector<128x32xbf16>
    %53 = vector.broadcast %49 : vector<128x1xf32> to vector<128x32xf32>
    %54 = arith.mulf %28, %53 : vector<128x32xf32>
    %55 = arith.truncf %54 : vector<128x32xf32> to vector<128x32xbf16>
    %cst_26 = arith.constant 0.000000e+00 : bf16
    %56 = vector.broadcast %cst_26 : bf16 to vector<128x128xbf16>
    %c0_27 = arith.constant 0 : index
    %c0_28 = arith.constant 0 : index
    %57 = vector.load %arg4[%c0_27, %c0_28] : memref<128x128xbf16, #tpu.memory_space<vmem>>, vector<128x128xbf16>
    tpu.vector_store %arg4[%c0_27, %c0_28], %56 {strides = array<i32>} : memref<128x128xbf16, #tpu.memory_space<vmem>>, vector<128x128xbf16>,
    %cst_29 = arith.constant 0.000000e+00 : bf16
    %58 = vector.broadcast %cst_29 : bf16 to vector<128x128xbf16>
    %c0_30 = arith.constant 0 : index
    %c0_31 = arith.constant 0 : index
    %59 = vector.load %arg5[%c0_30, %c0_31] : memref<128x128xbf16, #tpu.memory_space<vmem>>, vector<128x128xbf16>
    tpu.vector_store %arg5[%c0_30, %c0_31], %58 {strides = array<i32>} : memref<128x128xbf16, #tpu.memory_space<vmem>>, vector<128x128xbf16>,
    %c0_32 = arith.constant 0 : index
    %c0_33 = arith.constant 0 : index
    %60 = vector.load %arg4[%c0_32, %c0_33] : memref<128x128xbf16, #tpu.memory_space<vmem>>, vector<128x32xbf16>
    tpu.vector_store %arg4[%c0_32, %c0_33], %52 {strides = array<i32>} : memref<128x128xbf16, #tpu.memory_space<vmem>>, vector<128x32xbf16>,
    %c0_34 = arith.constant 0 : index
    %c0_35 = arith.constant 0 : index
    %61 = vector.load %arg5[%c0_34, %c0_35] : memref<128x128xbf16, #tpu.memory_space<vmem>>, vector<128x32xbf16>
    tpu.vector_store %arg5[%c0_34, %c0_35], %55 {strides = array<i32>} : memref<128x128xbf16, #tpu.memory_space<vmem>>, vector<128x32xbf16>,
    return
  }
  func.func @transform_0(%arg0: i32) -> (i32, i32) {
    %c0_i32 = arith.constant 0 : i32
    %c0_i32_0 = arith.constant 0 : i32
    return %arg0, %c0_i32 : i32, i32
  }
  func.func @transform_1(%arg0: i32) -> (i32, i32) {
    %c0_i32 = arith.constant 0 : i32
    %c0_i32_0 = arith.constant 0 : i32
    return %arg0, %c0_i32 : i32, i32
  }
  func.func @transform_2(%arg0: i32) -> (i32, i32) {
    %c0_i32 = arith.constant 0 : i32
    %c0_i32_0 = arith.constant 0 : i32
    return %arg0, %c0_i32 : i32, i32
  }
  func.func @transform_3(%arg0: i32) -> (i32, i32) {
    %c0_i32 = arith.constant 0 : i32
    %c0_i32_0 = arith.constant 0 : i32
    return %arg0, %c0_i32 : i32, i32
  }
  func.func @transform_4(%arg0: i32) -> (i32, i32) {
    %c0_i32 = arith.constant 0 : i32
    %c0_i32_0 = arith.constant 0 : i32
    return %arg0, %c0_i32 : i32, i32
  }
  func.func @transform_5(%arg0: i32) -> (i32, i32) {
    %c0_i32 = arith.constant 0 : i32
    %c0_i32_0 = arith.constant 0 : i32
    return %arg0, %c0_i32 : i32, i32
  }
  func.func @transform_6(%arg0: i32) -> (i32, i32) {
    %c0_i32 = arith.constant 0 : i32
    %c0_i32_0 = arith.constant 0 : i32
    return %arg0, %c0_i32 : i32, i32
  }
  func.func @transform_7(%arg0: i32) -> (i32, i32) {
    %c0_i32 = arith.constant 0 : i32
    %c0_i32_0 = arith.constant 0 : i32
    return %arg0, %c0_i32 : i32, i32
  }
}

</mosaic_0001>

<bundles_post_ra>
// kernel: tpu_custom_call.1
= control target key start
LH: loop header
LB: loop body
LE: loop exit
PB: predicated region body
PF: predicated region fallthrough
CT: control target
= control target key end

     0   :  { %13 = vsyncpa [#allocation3], 0  ;;  %v1525_v6 = vmov 0   ;;  %vm118_vm0 = vcmask 261120   ;;  %v1526_v12 = vmov 0.0   ;;  %s2629_s0 = inlined_call_operand.vmem [shape: f32[128,32], index: 0, kind: input, shape index: {}]   ;;  %s2630_s1 = inlined_call_operand.vmem [shape: f32[128,32], index: 1, kind: input, shape index: {}]   ;;  %s2631_s2 = inlined_call_operand.vmem [shape: f32[128,1], index: 2, kind: input, shape index: {}]   ;;  %s2632_s3 = inlined_call_operand.hbm [shape: bf16[128,128], index: 3, kind: output, shape index: {0}]   ;;  %s2633_s4 = inlined_call_operand.hbm [shape: bf16[128,128], index: 4, kind: output, shape index: {1}]   ;;  %s2634_s5 = inlined_call_operand.vmem [shape: f32[128,1], index: 5, kind: output, shape index: {2}]   ;;  %s2635_s6 = inlined_call_operand.vmem [shape: f32[128,1], index: 6, kind: output, shape index: {3}]   ;;  %s2636_s7 = inlined_call_operand.vmem [shape: f32[128,1], index: 7, kind: output, shape index: {4}]  }
   0x1   :  { %v1574_v0 = vld [vmem:[%s2629_s0 + $0x10] sm:$0xff]  ;;  %v38_v1 = vld [vmem:[%s2629_s0] sm:$0xff]  ;;  %v41_v2 = vld [vmem:[%s2629_s0 + $0x18] sm:$0xff]  ;;  %1323 = vset.pattern.permute.xlu1 %v1525_v6  ;;  %1032 = vst [vmem:[#allocation2] sm:$0xf] %v1525_v6  ;;  %1324 = vset.pattern.permute.xlu0 %v1525_v6 }
   0x2   :  { %v72_v3 = vand.u32 2147483647, %v1574_v0  ;;  %v70_v4 = vand.u32 2147483647, %v38_v1  ;;  %v73_v5 = vand.u32 2147483647, %v41_v2 }
   0x3   :  { %1033 = vst [vmem:[#allocation2 + $0x4] sm:$0xf] %v1525_v6  ;;  %1034 = vst [vmem:[#allocation2 + $0x8] sm:$0xf] %v1525_v6  ;;  %v1620_v7 = vld [vmem:[%s2629_s0 + $0x8] sm:$0xff]  ;;  %v1628_v9 = vld [vmem:[%s2629_s0 + $0x20] sm:$0xff] }
   0x4   :  { %1035 = vst [vmem:[#allocation2 + $0xc] sm:$0xf] %v1525_v6  ;;  %1036 = vst [vmem:[#allocation2 + $0x10] sm:$0xf] %v1525_v6  ;;  %v43_v8 = vld [vmem:[%s2629_s0 + $0x28] sm:$0xff]  ;;  %vm88_vm1 = vcmp.eq.f32.partialorder %v72_v3, inf }
   0x5   :  { %1037 = vst [vmem:[#allocation2 + $0x14] sm:$0xf] %v1525_v6  ;;  %1038 = vst [vmem:[#allocation2 + $0x18] sm:$0xf] %v1525_v6  ;;  %vm86_vm2 = vcmp.eq.f32.partialorder %v70_v4, inf  ;;  %vm89_vm3 = vcmp.eq.f32.partialorder %v73_v5, inf }
   0x6   :  { %1039 = vst [vmem:[#allocation2 + $0x1c] sm:$0xf] %v1525_v6  ;;  %1040 = vst [vmem:[#allocation2 + $0x20] sm:$0xf] %v1525_v6  ;;  %v71_v10 = vand.u32 2147483647, %v1620_v7 }
   0x7   :  { %1041 = vst [vmem:[#allocation2 + $0x24] sm:$0xf] %v1525_v6  ;;  %1042 = vst [vmem:[#allocation2 + $0x28] sm:$0xf] %v1525_v6  ;;  %v45_v11 = vld [vmem:[%s2629_s0 + $0x38] sm:$0xff]  ;;  %v104_v13 = vsel %vm88_vm1, 1.0, %v1526_v12 }
   0x8   :  { %1043 = vst [vmem:[#allocation2 + $0x2c] sm:$0xf] %v1525_v6  ;;  %1044 = vst [vmem:[#allocation2 + $0x30] sm:$0xf] %v1525_v6  ;;  %v102_v14 = vsel %vm86_vm2, 1.0, %v1526_v12  ;;  %v105_v15 = vsel %vm89_vm3, 1.0, %v1526_v12 }
   0x9   :  { %1045 = vst [vmem:[#allocation2 + $0x34] sm:$0xf] %v1525_v6  ;;  %1046 = vst [vmem:[#allocation2 + $0x38] sm:$0xf] %v1525_v6  ;;  %v75_v16 = vand.u32 2147483647, %v43_v8 }
   0xa   :  { %1047 = vst [vmem:[#allocation2 + $0x3c] sm:$0xf] %v1525_v6  ;;  %1048 = vst [vmem:[#allocation4] sm:$0xf] %v1525_v6  ;;  %v1640_v17 = vld [vmem:[%s2629_s0 + $0x30] sm:$0xff]  ;;  %v125_v18 = vsel %vm118_vm0, %v104_v13, -inf }
   0xb   :  { %1049 = vst [vmem:[#allocation4 + $0x4] sm:$0xf] %v1525_v6  ;;  %1050 = vst [vmem:[#allocation4 + $0x8] sm:$0xf] %v1525_v6  ;;  %v119_v19 = vsel %vm118_vm0, %v102_v14, -inf  ;;  %vm87_vm4 = vcmp.eq.f32.partialorder %v71_v10, inf  ;;  %126 = vmax.xlane.f32.xlu1 %v125_v18 }
   0xc   :  { %1051 = vst [vmem:[#allocation4 + $0xc] sm:$0xf] %v1525_v6  ;;  %1052 = vst [vmem:[#allocation4 + $0x10] sm:$0xf] %v1525_v6  ;;  %v47_v20 = vld [vmem:[%s2629_s0 + $0x48] sm:$0xff]  ;;  %v1650_v21 = vld [vmem:[%s2629_s0 + $0x40] sm:$0xff]  ;;  %120 = vmax.xlane.f32.xlu0 %v119_v19 }
   0xd   :  { %1053 = vst [vmem:[#allocation4 + $0x14] sm:$0xf] %v1525_v6  ;;  %1054 = vst [vmem:[#allocation4 + $0x18] sm:$0xf] %v1525_v6  ;;  %v103_v22 = vsel %vm87_vm4, 1.0, %v1526_v12  ;;  %vm91_vm5 = vcmp.eq.f32.partialorder %v75_v16, inf }
   0xe   :  { %1055 = vst [vmem:[#allocation4 + $0x1c] sm:$0xf] %v1525_v6  ;;  %1056 = vst [vmem:[#allocation4 + $0x20] sm:$0xf] %v1525_v6  ;;  %v74_v23 = vand.u32 2147483647, %v1628_v9 }
   0xf   :  { %1057 = vst [vmem:[#allocation4 + $0x24] sm:$0xf] %v1525_v6  ;;  %1058 = vst [vmem:[#allocation4 + $0x28] sm:$0xf] %v1525_v6  ;;  %v77_v24 = vand.u32 2147483647, %v45_v11 }
  0x10   :  { %1059 = vst [vmem:[#allocation4 + $0x2c] sm:$0xf] %v1525_v6  ;;  %1060 = vst [vmem:[#allocation4 + $0x30] sm:$0xf] %v1525_v6  ;;  %v128_v25 = vsel %vm118_vm0, %v105_v15, -inf  ;;  %v122_v26 = vsel %vm118_vm0, %v103_v22, -inf }
  0x11   :  { %1061 = vst [vmem:[#allocation4 + $0x34] sm:$0xf] %v1525_v6  ;;  %1062 = vst [vmem:[#allocation4 + $0x38] sm:$0xf] %v1525_v6  ;;  %v76_v27 = vand.u32 2147483647, %v1640_v17  ;;  %129 = vmax.xlane.f32.xlu1 %v128_v25  ;;  %123 = vmax.xlane.f32.xlu0 %v122_v26 }
  0x12   :  { %1063 = vst [vmem:[#allocation4 + $0x3c] sm:$0xf] %v1525_v6  ;;  %v107_v28 = vsel %vm91_vm5, 1.0, %v1526_v12  ;;  %vm90_vm6 = vcmp.eq.f32.partialorder %v74_v23, inf  ;;  %v79_v29 = vand.u32 2147483647, %v47_v20 }
  0x13   :  { %v106_v30 = vsel %vm90_vm6, 1.0, %v1526_v12  ;;  %vm93_vm7 = vcmp.eq.f32.partialorder %v77_v24, inf  ;;  %vm92_vm8 = vcmp.eq.f32.partialorder %v76_v27, inf  ;;  %v78_v31 = vand.u32 2147483647, %v1650_v21  ;;  %v49_v32 = vld [vmem:[%s2629_s0 + $0x58] sm:$0xff] }
  0x14   :  { %v1666_v33 = vld [vmem:[%s2629_s0 + $0x50] sm:$0xff]  ;;  %v134_v34 = vsel %vm118_vm0, %v107_v28, -inf  ;;  %v131_v35 = vsel %vm118_vm0, %v106_v30, -inf  ;;  %v109_v36 = vsel %vm93_vm7, 1.0, %v1526_v12  ;;  %v108_v37 = vsel %vm92_vm8, 1.0, %v1526_v12  ;;  %v51_v40 = vld [vmem:[%s2629_s0 + $0x68] sm:$0xff] }
  0x15   :  { %vm95_vm9 = vcmp.eq.f32.partialorder %v79_v29, inf  ;;  %vm94_vm10 = vcmp.eq.f32.partialorder %v78_v31, inf  ;;  %v81_v38 = vand.u32 2147483647, %v49_v32  ;;  %v80_v39 = vand.u32 2147483647, %v1666_v33  ;;  %135 = vmax.xlane.f32.xlu1 %v134_v34  ;;  %132 = vmax.xlane.f32.xlu0 %v131_v35 }
  0x16   :  { %v1679_v41 = vld [vmem:[%s2629_s0 + $0x60] sm:$0xff]  ;;  %v140_v42 = vsel %vm118_vm0, %v109_v36, -inf  ;;  %v137_v43 = vsel %vm118_vm0, %v108_v37, -inf  ;;  %v111_v44 = vsel %vm95_vm9, 1.0, %v1526_v12  ;;  %v110_v45 = vsel %vm94_vm10, 1.0, %v1526_v12  ;;  %v53_v46 = vld [vmem:[%s2629_s0 + $0x78] sm:$0xff] }
  0x17   :  { %vm97_vm11 = vcmp.eq.f32.partialorder %v81_v38, inf  ;;  %vm96_vm12 = vcmp.eq.f32.partialorder %v80_v39, inf  ;;  %v83_v47 = vand.u32 2147483647, %v51_v40  ;;  %v82_v48 = vand.u32 2147483647, %v1679_v41 }
  0x18   :  { %v1692_v49 = vld [vmem:[%s2629_s0 + $0x70] sm:$0xff]  ;;  %v146_v50 = vsel %vm118_vm0, %v111_v44, -inf  ;;  %v143_v51 = vsel %vm118_vm0, %v110_v45, -inf  ;;  %v113_v52 = vsel %vm97_vm11, 1.0, %v1526_v12  ;;  %v112_v53 = vsel %vm96_vm12, 1.0, %v1526_v12 }
  0x19   :  { %141 = vmax.xlane.f32.xlu1 %v140_v42  ;;  %138 = vmax.xlane.f32.xlu0 %v137_v43  ;;  %v85_v54 = vand.u32 2147483647, %v53_v46  ;;  %vm99_vm13 = vcmp.eq.f32.partialorder %v83_v47, inf  ;;  %vm98_vm14 = vcmp.eq.f32.partialorder %v82_v48, inf  ;;  %v84_v55 = vand.u32 2147483647, %v1692_v49 }
  0x1a   :  { %14 = vsyncpa [#allocation5], 0  ;;  %v152_v56 = vsel %vm118_vm0, %v113_v52, -inf  ;;  %v149_v57 = vsel %vm118_vm0, %v112_v53, -inf  ;;  %v115_v58 = vsel %vm99_vm13, 1.0, %v1526_v12  ;;  %v114_v59 = vsel %vm98_vm14, 1.0, %v1526_v12 }
  0x1b   :  { %vm101_vm15 = vcmp.eq.f32.partialorder %v85_v54, inf  ;;  %vm100_vm1 = vcmp.eq.f32.partialorder %v84_v55, inf  ;;  %v158_v60 = vsel %vm118_vm0, %v115_v58, -inf  ;;  %v155_v61 = vsel %vm118_vm0, %v114_v59, -inf  ;;  %v1712_v3 = vld [vmem:[%s2631_s2] sm:$0xff]  ;;  %v1718_v4 = vld [vmem:[%s2631_s2 + $0x10] sm:$0xff] }
  0x1c   :  { %v117_v62 = vsel %vm101_vm15, 1.0, %v1526_v12  ;;  %v116_v63 = vsel %vm100_vm1, 1.0, %v1526_v12  ;;  %vm343_vm2 = vcmp.gt.f32.partialorder %v1712_v3, 0.0  ;;  %v1723_v5 = vld [vmem:[%s2631_s2 + $0x8] sm:$0xff]  ;;  %vm345_vm3 = vcmp.gt.f32.partialorder %v1718_v4, 0.0  ;;  %v1731_v10 = vld [vmem:[%s2631_s2 + $0x20] sm:$0xff] }
  0x1d   :  { %147 = vmax.xlane.f32.xlu1 %v146_v50  ;;  %144 = vmax.xlane.f32.xlu0 %v143_v51  ;;  %v164_v1 = vsel %vm118_vm0, %v117_v62, -inf  ;;  %v161_v2 = vsel %vm118_vm0, %v116_v63, -inf  ;;  %v359_v8 = vsel %vm343_vm2, 1, %v1525_v6  ;;  %vm344_vm4 = vcmp.gt.f32.partialorder %v1723_v5, 0.0  ;;  %v1736_v11 = vld [vmem:[%s2631_s2 + $0x18] sm:$0xff]  ;;  %v1744_v14 = vld [vmem:[%s2631_s2 + $0x30] sm:$0xff] }
  0x1e   :  { %v361_v12 = vsel %vm345_vm3, 1, %v1525_v6  ;;  %v360_v13 = vsel %vm344_vm4, 1, %v1525_v6  ;;  %vm347_vm5 = vcmp.gt.f32.partialorder %v1731_v10, 0.0  ;;  %vm346_vm6 = vcmp.gt.f32.partialorder %v1736_v11, 0.0  ;;  %v1750_v15 = vld [vmem:[%s2631_s2 + $0x28] sm:$0xff]  ;;  %v1758_v19 = vld [vmem:[%s2631_s2 + $0x40] sm:$0xff] }
  0x1f   :  { %v363_v16 = vsel %vm347_vm5, 1, %v1525_v6  ;;  %vm349_vm7 = vcmp.gt.f32.partialorder %v1744_v14, 0.0  ;;  %v362_v18 = vsel %vm346_vm6, 1, %v1525_v6  ;;  %vm348_vm8 = vcmp.gt.f32.partialorder %v1750_v15, 0.0  ;;  %v1764_v20 = vld [vmem:[%s2631_s2 + $0x38] sm:$0xff]  ;;  %v1772_v24 = vld [vmem:[%s2631_s2 + $0x50] sm:$0xff] }
  0x20   :  { %v365_v22 = vsel %vm349_vm7, 1, %v1525_v6  ;;  %vm351_vm9 = vcmp.gt.f32.partialorder %v1758_v19, 0.0  ;;  %v364_v23 = vsel %vm348_vm8, 1, %v1525_v6  ;;  %vm350_vm10 = vcmp.gt.f32.partialorder %v1764_v20, 0.0  ;;  %v1778_v25 = vld [vmem:[%s2631_s2 + $0x48] sm:$0xff]  ;;  %v1786_v28 = vld [vmem:[%s2631_s2 + $0x60] sm:$0xff] }
  0x21   :  { %153 = vmax.xlane.f32.xlu1 %v152_v56  ;;  %150 = vmax.xlane.f32.xlu0 %v149_v57  ;;  %v367_v26 = vsel %vm351_vm9, 1, %v1525_v6  ;;  %vm353_vm11 = vcmp.gt.f32.partialorder %v1772_v24, 0.0  ;;  %v366_v27 = vsel %vm350_vm10, 1, %v1525_v6  ;;  %vm352_vm12 = vcmp.gt.f32.partialorder %v1778_v25, 0.0  ;;  %v1792_v29 = vld [vmem:[%s2631_s2 + $0x58] sm:$0xff]  ;;  %v1800_v32 = vld [vmem:[%s2631_s2 + $0x70] sm:$0xff] }
  0x22   :  { %v369_v30 = vsel %vm353_vm11, 1, %v1525_v6  ;;  %vm355_vm13 = vcmp.gt.f32.partialorder %v1786_v28, 0.0  ;;  %v368_v31 = vsel %vm352_vm12, 1, %v1525_v6  ;;  %vm354_vm14 = vcmp.gt.f32.partialorder %v1792_v29, 0.0  ;;  %s1528_s19 = smov [#allocation4]  }
  0x23   :  { %v371_v34 = vsel %vm355_vm13, 1, %v1525_v6  ;;  %vm357_vm15 = vcmp.gt.f32.partialorder %v1800_v32, 0.0  ;;  %v370_v35 = vsel %vm354_vm14, 1, %v1525_v6  ;;  %v169_v37 = vsub.f32 1.0, %v1718_v4  ;;  %s1226_s20 = sshll.u32 %s1528_s19, 4  ;;  %s2597_s20 = int_to_ptr.vmem [resolvable:$true] %s1226_s20 }
  0x24   :  { %v373_v36 = vsel %vm357_vm15, 1, %v1525_v6  ;;  %v167_v38 = vsub.f32 1.0, %v1712_v3  ;;  %vm823_vm1 = vcmask 7168   ;;  %v170_v45 = vsub.f32 1.0, %v1736_v11 }
  0x25   :  { %159 = vmax.xlane.f32.xlu1 %v158_v60  ;;  %156 = vmax.xlane.f32.xlu0 %v155_v61  ;;  %v168_v47 = vsub.f32 1.0, %v1723_v5  ;;  %v172_v54 = vsub.f32 1.0, %v1750_v15  ;;  %v171_v56 = vsub.f32 1.0, %v1731_v10  ;;  %v174_v62 = vsub.f32 1.0, %v1764_v20 }
  0x29   :  { %165 = vmax.xlane.f32.xlu1 %v164_v1  ;;  %162 = vmax.xlane.f32.xlu0 %v161_v2  ;;  %v173_v1 = vsub.f32 1.0, %v1744_v14 }
  0x3a   :  { %376 = vperm.xlu1 %1323, %v359_v8  }
  0x3e   :  { %382 = vperm.xlu1 %1323, %v361_v12  }
  0x3f   :  { %379 = vperm.xlu0 %1324, %v360_v13  }
  0x42   :  { %388 = vperm.xlu1 %1323, %v363_v16  }
  0x43   :  { %385 = vperm.xlu0 %1324, %v362_v18   ;;  %v176_v18 = vsub.f32 1.0, %v1778_v25 }
  0x46   :  { %394 = vperm.xlu1 %1323, %v365_v22  }
  0x47   :  { %391 = vperm.xlu0 %1324, %v364_v23   ;;  %v175_v23 = vsub.f32 1.0, %v1758_v19 }
  0x4a   :  { %400 = vperm.xlu1 %1323, %v367_v26  }
  0x4b   :  { %397 = vperm.xlu0 %1324, %v366_v27  }
  0x4e   :  { %406 = vperm.xlu1 %1323, %v369_v30  }
  0x4f   :  { %403 = vperm.xlu0 %1324, %v368_v31  }
  0x52   :  { %412 = vperm.xlu1 %1323, %v371_v34  }
  0x53   :  { %409 = vperm.xlu0 %1324, %v370_v35   ;;  %v178_v35 = vsub.f32 1.0, %v1792_v29 }
  0x56   :  { %418 = vperm.xlu1 %1323, %v373_v36  }
  0x98   :  { %v127_v39 = vpop.xlane.xlu1 %126 }
  0x99   :  { %v121_v40 = vpop.xlane.xlu0 %120  ;;  %v185_v42 = vsub.f32 1.0, %v127_v39  ;;  %v1882_v39 = vld [vmem:[%s2631_s2 + $0x68] sm:$0xff] }
  0x9a   :  { %v183_v43 = vsub.f32 1.0, %v121_v40 }
  0x9b   :  { %v1809_v44 = vmul.f32 %v185_v42, %v169_v37  ;;  %v177_v37 = vsub.f32 1.0, %v1772_v24 }
  0x9c   :  { %v1812_v46 = vmul.f32 %v183_v43, %v167_v38 }
  0x9d   :  { %874 = vst.msk [vmem:[%s2636_s7 + $0x10] sm:$0xff] %vm823_vm1, %v1809_v44 }
  0x9e   :  { %v130_v48 = vpop.xlane.xlu1 %129  ;;  %v124_v50 = vpop.xlane.xlu0 %123  ;;  %872 = vst.msk [vmem:[%s2636_s7] sm:$0xff] %vm823_vm1, %v1812_v46 }
  0x9f   :  { %v186_v51 = vsub.f32 1.0, %v130_v48  ;;  %v184_v52 = vsub.f32 1.0, %v124_v50  ;;  %v179_v50 = vsub.f32 1.0, %v1786_v28 }
  0xa1   :  { %v1825_v53 = vmul.f32 %v186_v51, %v170_v45  ;;  %v1828_v55 = vmul.f32 %v184_v52, %v168_v47  ;;  %v180_v47 = vsub.f32 1.0, %v1882_v39  ;;  %v1903_v52 = vld [vmem:[%s2631_s2 + $0x78] sm:$0xff] }
  0xa2   :  { %v136_v57 = vpop.xlane.xlu1 %135  ;;  %v133_v58 = vpop.xlane.xlu0 %132 }
  0xa3   :  { %875 = vst.msk [vmem:[%s2636_s7 + $0x18] sm:$0xff] %vm823_vm1, %v1825_v53  ;;  %v188_v59 = vsub.f32 1.0, %v136_v57  ;;  %873 = vst.msk [vmem:[%s2636_s7 + $0x8] sm:$0xff] %vm823_vm1, %v1828_v55  ;;  %v187_v60 = vsub.f32 1.0, %v133_v58 }
  0xa5   :  { %v1841_v61 = vmul.f32 %v188_v59, %v172_v54  ;;  %v1844_v63 = vmul.f32 %v187_v60, %v171_v56  ;;  %v182_v59 = vsub.f32 1.0, %v1903_v52 }
  0xa6   :  { %v142_v2 = vpop.xlane.xlu1 %141  ;;  %v139_v8 = vpop.xlane.xlu0 %138 }
  0xa7   :  { %877 = vst.msk [vmem:[%s2636_s7 + $0x28] sm:$0xff] %vm823_vm1, %v1841_v61  ;;  %v190_v12 = vsub.f32 1.0, %v142_v2  ;;  %876 = vst.msk [vmem:[%s2636_s7 + $0x20] sm:$0xff] %vm823_vm1, %v1844_v63  ;;  %v189_v13 = vsub.f32 1.0, %v139_v8 }
  0xa9   :  { %v1857_v16 = vmul.f32 %v190_v12, %v174_v62  ;;  %v1860_v22 = vmul.f32 %v189_v13, %v173_v1  ;;  %v181_v62 = vsub.f32 1.0, %v1800_v32 }
  0xaa   :  { %v148_v26 = vpop.xlane.xlu1 %147  ;;  %v145_v27 = vpop.xlane.xlu0 %144 }
  0xab   :  { %879 = vst.msk [vmem:[%s2636_s7 + $0x38] sm:$0xff] %vm823_vm1, %v1857_v16  ;;  %v192_v30 = vsub.f32 1.0, %v148_v26  ;;  %878 = vst.msk [vmem:[%s2636_s7 + $0x30] sm:$0xff] %vm823_vm1, %v1860_v22  ;;  %v191_v31 = vsub.f32 1.0, %v145_v27 }
  0xad   :  { %v1873_v34 = vmul.f32 %v192_v30, %v176_v18  ;;  %v1876_v36 = vmul.f32 %v191_v31, %v175_v23  ;;  %v54_v23 = vld [vmem:[%s2630_s1] sm:$0xff]  ;;  %v55_v30 = vld [vmem:[%s2630_s1 + $0x8] sm:$0xff]  ;;  %v56_v31 = vld [vmem:[%s2630_s1 + $0x10] sm:$0xff] }
  0xae   :  { %v154_v38 = vpop.xlane.xlu1 %153  ;;  %v151_v40 = vpop.xlane.xlu0 %150 }
  0xaf   :  { %881 = vst.msk [vmem:[%s2636_s7 + $0x48] sm:$0xff] %vm823_vm1, %v1873_v34  ;;  %v194_v42 = vsub.f32 1.0, %v154_v38  ;;  %880 = vst.msk [vmem:[%s2636_s7 + $0x40] sm:$0xff] %vm823_vm1, %v1876_v36  ;;  %v193_v43 = vsub.f32 1.0, %v151_v40 }
  0xb1   :  { %v1894_v45 = vmul.f32 %v194_v42, %v178_v35  ;;  %v1897_v48 = vmul.f32 %v193_v43, %v177_v37 }
  0xb2   :  { %v160_v51 = vpop.xlane.xlu1 %159  ;;  %v157_v54 = vpop.xlane.xlu0 %156 }
  0xb3   :  { %883 = vst.msk [vmem:[%s2636_s7 + $0x58] sm:$0xff] %vm823_vm1, %v1894_v45  ;;  %v196_v56 = vsub.f32 1.0, %v160_v51  ;;  %882 = vst.msk [vmem:[%s2636_s7 + $0x50] sm:$0xff] %vm823_vm1, %v1897_v48  ;;  %v195_v57 = vsub.f32 1.0, %v157_v54 }
  0xb5   :  { %v1915_v58 = vmul.f32 %v196_v56, %v180_v47  ;;  %v1918_v60 = vmul.f32 %v195_v57, %v179_v50  ;;  %v216_v56 = vadd.f32 %v1828_v55, %v1723_v5  ;;  %v215_v57 = vadd.f32 %v1812_v46, %v1712_v3 }
  0xb6   :  { %v166_v1 = vpop.xlane.xlu1 %165  ;;  %v163_v2 = vpop.xlane.xlu0 %162 }
  0xb7   :  { %885 = vst.msk [vmem:[%s2636_s7 + $0x68] sm:$0xff] %vm823_vm1, %v1915_v58  ;;  %v198_v8 = vsub.f32 1.0, %v166_v1  ;;  %884 = vst.msk [vmem:[%s2636_s7 + $0x60] sm:$0xff] %vm823_vm1, %v1918_v60  ;;  %v197_v12 = vsub.f32 1.0, %v163_v2  ;;  %vm232_vm5 = vcmp.gt.f32.partialorder %v216_v56, 0.0  ;;  %vm231_vm6 = vcmp.gt.f32.partialorder %v215_v57, 0.0 }
  0xb8   :  { %v218_v1 = vadd.f32 %v1825_v53, %v1736_v11  ;;  %v224_v2 = vadd.f32 %v1873_v34, %v1778_v25  ;;  %v247_v5 = vsel %vm231_vm6, 1, %v1525_v6 }
  0xb9   :  { %v1931_v13 = vmul.f32 %v198_v8, %v182_v59  ;;  %v1933_v18 = vmul.f32 %v197_v12, %v181_v62  ;;  %v217_v59 = vadd.f32 %v1809_v44, %v1718_v4  ;;  %v248_v62 = vsel %vm232_vm5, 1, %v1525_v6 }
  0xba   :  { %v377_v26 = vpop.permute.xlu1 %376  ;;  %v219_v8 = vadd.f32 %v1844_v63, %v1731_v10  ;;  %vm234_vm8 = vcmp.gt.f32.partialorder %v218_v1, 0.0  ;;  %vm240_vm9 = vcmp.gt.f32.partialorder %v224_v2, 0.0  ;;  %v226_v4 = vadd.f32 %v1894_v45, %v1792_v29  ;;  %v62_v2 = vld [vmem:[%s2630_s1 + $0x40] sm:$0xff] }
  0xbb   :  { %887 = vst.msk [vmem:[%s2636_s7 + $0x78] sm:$0xff] %vm823_vm1, %v1931_v13  ;;  %886 = vst.msk [vmem:[%s2636_s7 + $0x70] sm:$0xff] %vm823_vm1, %v1933_v18  ;;  %vm423_vm2 = vcmp.eq.s32.totalorder %v377_v26, 1  ;;  %vm233_vm7 = vcmp.gt.f32.partialorder %v217_v59, 0.0  ;;  %v250_v11 = vsel %vm234_vm8, 1, %v1525_v6  ;;  %v256_v25 = vsel %vm240_vm9, 1, %v1525_v6 }
  0xbc   :  { %v1948_v27 = vsel %vm423_vm2, %v54_v23, 0.0  ;;  %v249_v3 = vsel %vm233_vm7, 1, %v1525_v6  ;;  %vm235_vm10 = vcmp.gt.f32.partialorder %v219_v8, 0.0  ;;  %v220_v12 = vadd.f32 %v1841_v61, %v1750_v15 }
  0xbd   :  { %v631_v35 = vmul.f32 %v1948_v27, %v1948_v27  ;;  %v251_v10 = vsel %vm235_vm10, 1, %v1525_v6  ;;  %vm242_vm11 = vcmp.gt.f32.partialorder %v226_v4, 0.0  ;;  %v228_v23 = vadd.f32 %v1915_v58, %v1882_v39  ;;  %v64_v4 = vld [vmem:[%s2630_s1 + $0x50] sm:$0xff] }
  0xbe   :  { %v380_v37 = vpop.permute.xlu0 %379  ;;  %v383_v38 = vpop.permute.xlu1 %382  ;;  %v221_v26 = vadd.f32 %v1860_v22, %v1744_v14  ;;  %v258_v29 = vsel %vm242_vm11, 1, %v1525_v6  ;;  %vm236_vm12 = vcmp.gt.f32.partialorder %v220_v12, 0.0  ;;  %v223_v14 = vadd.f32 %v1876_v36, %v1758_v19 }
  0xbf   :  { %vm424_vm3 = vcmp.eq.s32.totalorder %v380_v37, 1  ;;  %vm425_vm4 = vcmp.eq.s32.totalorder %v383_v38, 1  ;;  %v647_v40 = vsel %vm118_vm0, %v631_v35, 0.0  ;;  %vm244_vm13 = vcmp.gt.f32.partialorder %v228_v23, 0.0  ;;  %v66_v23 = vld [vmem:[%s2630_s1 + $0x60] sm:$0xff] }
  0xc0   :  { %v1959_v42 = vsel %vm424_vm3, %v55_v30, 0.0  ;;  %v1961_v43 = vsel %vm425_vm4, %v56_v31, 0.0  ;;  %648 = vadd.xlane.f32.xlu0 %v647_v40  ;;  %vm237_vm14 = vcmp.gt.f32.partialorder %v221_v26, 0.0  ;;  %v252_v30 = vsel %vm236_vm12, 1, %v1525_v6 }
  0xc1   :  { %v632_v47 = vmul.f32 %v1959_v42, %v1959_v42  ;;  %v633_v50 = vmul.f32 %v1961_v43, %v1961_v43  ;;  %v260_v15 = vsel %vm244_vm13, 1, %v1525_v6  ;;  %v222_v31 = vadd.f32 %v1857_v16, %v1764_v20 }
  0xc2   :  { %v253_v35 = vsel %vm237_vm14, 1, %v1525_v6  ;;  %vm239_vm2 = vcmp.gt.f32.partialorder %v223_v14, 0.0  ;;  %v225_v37 = vadd.f32 %v1897_v48, %v1772_v24  ;;  %v227_v20 = vadd.f32 %v1918_v60, %v1786_v28  ;;  %v386_v26 = vpop.permute.xlu0 %385 }
  0xc3   :  { %v650_v51 = vsel %vm118_vm0, %v632_v47, 0.0  ;;  %v653_v54 = vsel %vm118_vm0, %v633_v50, 0.0  ;;  %vm238_vm15 = vcmp.gt.f32.partialorder %v222_v31, 0.0  ;;  %v255_v40 = vsel %vm239_vm2, 1, %v1525_v6  ;;  %v389_v47 = vpop.permute.xlu1 %388 }
  0xc4   :  { %651 = vadd.xlane.f32.xlu1 %v650_v51  ;;  %654 = vadd.xlane.f32.xlu0 %v653_v54  ;;  %v254_v38 = vsel %vm238_vm15, 1, %v1525_v6  ;;  %vm241_vm3 = vcmp.gt.f32.partialorder %v225_v37, 0.0  ;;  %vm243_vm4 = vcmp.gt.f32.partialorder %v227_v20, 0.0  ;;  %v229_v19 = vadd.f32 %v1933_v18, %v1800_v32  ;;  %v58_v54 = vld [vmem:[%s2630_s1 + $0x20] sm:$0xff]  ;;  %v60_v32 = vld [vmem:[%s2630_s1 + $0x30] sm:$0xff]  ;;  %v59_v20 = vld [vmem:[%s2630_s1 + $0x28] sm:$0xff] }
  0xc5   :  { %v257_v50 = vsel %vm241_vm3, 1, %v1525_v6  ;;  %v259_v24 = vsel %vm243_vm4, 1, %v1525_v6  ;;  %vm427_vm6 = vcmp.eq.s32.totalorder %v389_v47, 1  ;;  %vm426_vm11 = vcmp.eq.s32.totalorder %v386_v26, 1 }
  0xc6   :  { %vm245_vm5 = vcmp.gt.f32.partialorder %v229_v19, 0.0  ;;  %v2017_v57 = vsel %vm427_vm6, %v58_v54, 0.0  ;;  %v392_v14 = vpop.permute.xlu0 %391  ;;  %vm356_vm15 = vcmp.gt.f32.partialorder %v1882_v39, 0.0  ;;  %vm358_vm3 = vcmp.gt.f32.partialorder %v1903_v52, 0.0 }
  0xc7   :  { %v395_v51 = vpop.permute.xlu1 %394  ;;  %v261_v28 = vsel %vm245_vm5, 1, %v1525_v6  ;;  %v635_v59 = vmul.f32 %v2017_v57, %v2017_v57  ;;  %vm428_vm12 = vcmp.eq.s32.totalorder %v392_v14, 1  ;;  %v230_v39 = vadd.f32 %v1931_v13, %v1903_v52 }
  0xc8   :  { %vm429_vm7 = vcmp.eq.s32.totalorder %v395_v51, 1  ;;  %v2064_v19 = vsel %vm428_vm12, %v59_v20, 0.0  ;;  %v374_v26 = vsel %vm358_vm3, 1, %v1525_v6 }
  0xc9   :  { %vm246_vm4 = vcmp.gt.f32.partialorder %v230_v39, 0.0 }
  0xcb   :  { %v401_v56 = vpop.permute.xlu1 %400 }
  0xcc   :  { %vm431_vm8 = vcmp.eq.s32.totalorder %v401_v56, 1 }
  0xcf   :  { %v407_v1 = vpop.permute.xlu1 %406 }
  0xd0   :  { %vm433_vm9 = vcmp.eq.s32.totalorder %v407_v1, 1 }
  0xd5   :  { %267 = vperm.xlu1 %1323, %v248_v62   ;;  %v2024_v62 = vsel %vm429_vm7, %v60_v32, 0.0  ;;  %v63_v32 = vld [vmem:[%s2630_s1 + $0x48] sm:$0xff] }
  0xd6   :  { %v637_v8 = vmul.f32 %v2024_v62, %v2024_v62 }
  0xd9   :  { %270 = vperm.xlu1 %1323, %v249_v3   ;;  %v2032_v3 = vsel %vm431_vm8, %v62_v2, 0.0 }
  0xda   :  { %264 = vperm.xlu0 %1324, %v247_v5   ;;  %v659_v5 = vsel %vm118_vm0, %v635_v59, 0.0  ;;  %v639_v12 = vmul.f32 %v2032_v3, %v2032_v3 }
  0xdd   :  { %273 = vperm.xlu1 %1323, %v250_v11   ;;  %v413_v11 = vpop.permute.xlu1 %412 }
  0xde   :  { %291 = vperm.xlu0 %1324, %v256_v25   ;;  %v665_v25 = vsel %vm118_vm0, %v637_v8, 0.0  ;;  %vm435_vm10 = vcmp.eq.s32.totalorder %v413_v11, 1  ;;  %v65_v8 = vld [vmem:[%s2630_s1 + $0x58] sm:$0xff]  ;;  %v372_v11 = vsel %vm356_vm15, 1, %v1525_v6  ;;  %vm1120_vm15 = vcmask 257024  }
  0xe1   :  { %276 = vperm.xlu1 %1323, %v251_v10   ;;  %v2040_v10 = vsel %vm433_vm9, %v64_v4, 0.0 }
  0xe2   :  { %297 = vperm.xlu0 %1324, %v258_v29   ;;  %v671_v29 = vsel %vm118_vm0, %v639_v12, 0.0 }
  0xe5   :  { %279 = vperm.xlu1 %1323, %v252_v30   ;;  %v641_v30 = vmul.f32 %v2040_v10, %v2040_v10 }
  0xe6   :  { %303 = vperm.xlu0 %1324, %v260_v15   ;;  %v2048_v15 = vsel %vm435_vm10, %v66_v23, 0.0 }
  0xe7   :  { %v677_v31 = vsel %vm118_vm0, %v641_v30, 0.0 }
  0xe9   :  { %282 = vperm.xlu1 %1323, %v253_v35   ;;  %v643_v35 = vmul.f32 %v2048_v15, %v2048_v15 }
  0xeb   :  { %v683_v37 = vsel %vm118_vm0, %v643_v35, 0.0  ;;  %v2101_v35 = vpop.permute.xlu1 %418 }
  0xed   :  { %285 = vperm.xlu1 %1323, %v254_v38   ;;  %v57_v38 = vld [vmem:[%s2630_s1 + $0x18] sm:$0xff] }
  0xee   :  { %v2057_v47 = vsel %vm426_vm11, %v57_v38, 0.0 }
  0xf1   :  { %288 = vperm.xlu1 %1323, %v255_v40   ;;  %v398_v40 = vpop.permute.xlu0 %397 }
  0xf2   :  { %vm430_vm13 = vcmp.eq.s32.totalorder %v398_v40, 1 }
  0xf5   :  { %294 = vperm.xlu1 %1323, %v257_v50   ;;  %v634_v50 = vmul.f32 %v2057_v47, %v2057_v47  ;;  %v404_v51 = vpop.permute.xlu0 %403 }
  0xf6   :  { %vm432_vm14 = vcmp.eq.s32.totalorder %v404_v51, 1 }
  0xf7   :  { %v656_v54 = vsel %vm118_vm0, %v634_v50, 0.0 }
  0xf9   :  { %300 = vperm.xlu1 %1323, %v259_v24   ;;  %v61_v24 = vld [vmem:[%s2630_s1 + $0x38] sm:$0xff]  ;;  %v410_v59 = vpop.permute.xlu0 %409 }
  0xfa   :  { %v2072_v56 = vsel %vm430_vm13, %v61_v24, 0.0  ;;  %vm434_vm2 = vcmp.eq.s32.totalorder %v410_v59, 1 }
  0xfb   :  { %v638_v2 = vmul.f32 %v2072_v56, %v2072_v56  ;;  %v2090_v12 = vsel %vm434_vm2, %v65_v8, 0.0 }
  0xfd   :  { %306 = vperm.xlu1 %1323, %v261_v28   ;;  %v636_v28 = vmul.f32 %v2064_v19, %v2064_v19  ;;  %v668_v4 = vsel %vm118_vm0, %v638_v2, 0.0 }
  0xff   :  { %v662_v1 = vsel %vm118_vm0, %v636_v28, 0.0 }
 0x105   :  { %660 = vadd.xlane.f32.xlu0 %v659_v5  ;;  %v2080_v5 = vsel %vm432_vm14, %v63_v32, 0.0 }
 0x109   :  { %666 = vadd.xlane.f32.xlu0 %v665_v25  ;;  %v640_v25 = vmul.f32 %v2080_v5, %v2080_v5 }
 0x10b   :  { %v674_v23 = vsel %vm118_vm0, %v640_v25, 0.0 }
 0x10d   :  { %672 = vadd.xlane.f32.xlu0 %v671_v29  ;;  %v642_v29 = vmul.f32 %v2090_v12, %v2090_v12 }
 0x10f   :  { %v680_v30 = vsel %vm118_vm0, %v642_v29, 0.0 }
 0x111   :  { %678 = vadd.xlane.f32.xlu0 %v677_v31  ;;  %v262_v31 = vsel %vm246_vm4, 1, %v1525_v6 }
 0x115   :  { %684 = vadd.xlane.f32.xlu0 %v683_v37 }
 0x121   :  { %657 = vadd.xlane.f32.xlu1 %v656_v54 }
 0x125   :  { %663 = vadd.xlane.f32.xlu1 %v662_v1 }
 0x129   :  { %669 = vadd.xlane.f32.xlu1 %v668_v4 }
 0x12b   :  { %415 = vperm.xlu0 %1324, %v372_v11  }
 0x12d   :  { %675 = vadd.xlane.f32.xlu1 %v674_v23 }
 0x12f   :  { %421 = vperm.xlu0 %1324, %v374_v26  }
 0x131   :  { %681 = vadd.xlane.f32.xlu1 %v680_v30 }
 0x133   :  { %309 = vperm.xlu0 %1324, %v262_v31  }
 0x14d   :  { %v649_v14 = vpop.xlane.xlu0 %648 }
 0x14e   :  { %1325 = vrsqrt.f32 %v649_v14  ;;  %vm697_vm6 = vcmp.eq.f32.partialorder %v649_v14, inf  ;;  %v700_v24 = vand.u32 2147483648, %v649_v14  ;;  %vm699_vm8 = vcmp.eq.f32.partialorder %v649_v14, 0.0 }
 0x151   :  { %v655_v52 = vpop.xlane.xlu0 %654  ;;  %v652_v37 = vpop.xlane.xlu1 %651 }
 0x152   :  { %1327 = vrsqrt.f32 %v655_v52  ;;  %vm711_vm9 = vcmp.eq.f32.partialorder %v655_v52, inf  ;;  %vm704_vm10 = vcmp.eq.f32.partialorder %v652_v37, inf  ;;  %v707_v11 = vand.u32 2147483648, %v652_v37 }
 0x153   :  { %1329 = vrsqrt.f32 %v652_v37  ;;  %v714_v39 = vand.u32 2147483648, %v655_v52  ;;  %vm706_vm11 = vcmp.eq.f32.partialorder %v652_v37, 0.0  ;;  %vm713_vm12 = vcmp.eq.f32.partialorder %v655_v52, 0.0 }
 0x155   :  { %v268_v38 = vpop.permute.xlu1 %267 }
 0x156   :  { %vm312_vm5 = vcmp.eq.s32.totalorder %v268_v38, 1 }
 0x157   :  { %v2104_v40 = vsel %vm312_vm5, %v1620_v7, 0.0  ;;  %vm437_vm5 = vcmp.eq.s32.totalorder %v2101_v35, 1 }
 0x158   :  { %v1326_v20 = vpop.eup %1325  ;;  %v456_v50 = vmul.f32 %v2104_v40, %v2104_v40 }
 0x159   :  { %v696_v51 = vmul.f32 %v1326_v20, %v649_v14  ;;  %v271_v6 = vpop.permute.xlu1 %270 }
 0x15a   :  { %vm313_vm7 = vcmp.eq.s32.totalorder %v271_v6, 1  ;;  %v474_v54 = vsel %vm118_vm0, %v456_v50, 0.0 }
 0x15b   :  { %v698_v28 = vsel %vm697_vm6, %v649_v14, %v696_v51  ;;  %v2110_v32 = vsel %vm313_vm7, %v1574_v0, 0.0  ;;  %475 = vadd.xlane.f32.xlu0 %v474_v54 }
 0x15c   :  { %v1328_v59 = vpop.eup %1327  ;;  %v701_v7 = vsel %vm699_vm8, %v700_v24, %v698_v28  ;;  %v457_v1 = vmul.f32 %v2110_v32, %v2110_v32 }
 0x15d   :  { %v1330_v2 = vpop.eup %1329  ;;  %v936_v8 = vmax.f32 %v701_v7, 1e-12  ;;  %v710_v4 = vmul.f32 %v1328_v59, %v655_v52  ;;  %v2114_v25 = vpop.permute.xlu1 %273 }
 0x15e   :  { %v703_v23 = vmul.f32 %v1330_v2, %v652_v37  ;;  %v477_v0 = vsel %vm118_vm0, %v457_v1, 0.0 }
 0x15f   :  { %1331 = vrcp.f32 %v936_v8  ;;  %v712_v26 = vsel %vm711_vm9, %v655_v52, %v710_v4  ;;  %478 = vadd.xlane.f32.xlu0 %v477_v0 }
 0x160   :  { %v715_v29 = vsel %vm713_vm12, %v714_v39, %v712_v26  ;;  %v705_v30 = vsel %vm704_vm10, %v652_v37, %v703_v23 }
 0x161   :  { %v938_v31 = vmax.f32 %v715_v29, 1e-12  ;;  %v708_v14 = vsel %vm706_vm11, %v707_v11, %v705_v30  ;;  %v277_v38 = vpop.permute.xlu1 %276 }
 0x162   :  { %v937_v20 = vmax.f32 %v708_v14, 1e-12  ;;  %vm315_vm13 = vcmp.eq.s32.totalorder %v277_v38, 1  ;;  %v68_v14 = vld [vmem:[%s2630_s1 + $0x70] sm:$0xff] }
 0x163   :  { %1333 = vrcp.f32 %v938_v31  ;;  %v2118_v50 = vsel %vm315_vm13, %v1628_v9, 0.0 }
 0x164   :  { %1335 = vrcp.f32 %v937_v20  ;;  %v459_v51 = vmul.f32 %v2118_v50, %v2118_v50 }
 0x165   :  { %v2122_v6 = vpop.permute.xlu1 %279 }
 0x166   :  { %v483_v52 = vsel %vm118_vm0, %v459_v51, 0.0 }
 0x167   :  { %484 = vadd.xlane.f32.xlu0 %v483_v52  ;;  %v2163_v52 = vsel %vm437_vm5, %v68_v14, 0.0 }
 0x169   :  { %v1332_v24 = vpop.eup %1331  ;;  %v283_v37 = vpop.permute.xlu1 %282 }
 0x16a   :  { %v1008_v54 = vmul.f32 %v1332_v24, %v1948_v27  ;;  %vm317_vm14 = vcmp.eq.s32.totalorder %v283_v37, 1 }
 0x16b   :  { %v2127_v28 = vsel %vm317_vm14, %v1640_v17, 0.0 }
 0x16c   :  { %v1301_v9 = vpack.c.bf16 %v1008_v54, %v1008_v54  ;;  %v461_v59 = vmul.f32 %v2127_v28, %v2127_v28  ;;  %v645_v54 = vmul.f32 %v2163_v52, %v2163_v52 }
 0x16d   :  { %v1334_v7 = vpop.eup %1333  ;;  %v2131_v1 = vpop.permute.xlu1 %285 }
 0x16e   :  { %v1336_v2 = vpop.eup %1335  ;;  %1193 = vst.msk [vmem:[#allocation4] sm:$0xf] %vm1120_vm15, %v1301_v9  ;;  %v1010_v8 = vmul.f32 %v1334_v7, %v1961_v43  ;;  %v489_v4 = vsel %vm118_vm0, %v461_v59, 0.0  ;;  %v689_v9 = vsel %vm118_vm0, %v645_v54, 0.0 }
 0x16f   :  { %v1009_v27 = vmul.f32 %v1336_v2, %v1959_v42  ;;  %490 = vadd.xlane.f32.xlu0 %v489_v4 }
 0x170   :  { %v1303_v11 = vpack.c.bf16 %v1010_v8, %v1010_v8 }
 0x171   :  { %v1302_v17 = vpack.c.bf16 %v1009_v27, %v1009_v27  ;;  %v289_v39 = vpop.permute.xlu1 %288 }
 0x172   :  { %1195 = vst.msk [vmem:[#allocation4 + $0x8] sm:$0xf] %vm1120_vm15, %v1303_v11  ;;  %vm319_vm2 = vcmp.eq.s32.totalorder %v289_v39, 1 }
 0x173   :  { %1194 = vst.msk [vmem:[#allocation4 + $0x4] sm:$0xf] %vm1120_vm15, %v1302_v17  ;;  %v2140_v23 = vsel %vm319_vm2, %v1650_v21, 0.0 }
 0x174   :  { %v463_v0 = vmul.f32 %v2140_v23, %v2140_v23 }
 0x175   :  { %v295_v43 = vpop.permute.xlu1 %294 }
 0x176   :  { %vm321_vm3 = vcmp.eq.s32.totalorder %v295_v43, 1  ;;  %v495_v26 = vsel %vm118_vm0, %v463_v0, 0.0 }
 0x177   :  { %v2146_v42 = vsel %vm321_vm3, %v1666_v33, 0.0  ;;  %496 = vadd.xlane.f32.xlu0 %v495_v26  ;;  %v2158_v33 = vpop.permute.xlu0 %264 }
 0x178   :  { %v465_v29 = vmul.f32 %v2146_v42, %v2146_v42  ;;  %vm311_vm13 = vcmp.eq.s32.totalorder %v2158_v33, 1 }
 0x179   :  { %v301_v30 = vpop.permute.xlu1 %300 }
 0x17a   :  { %vm323_vm4 = vcmp.eq.s32.totalorder %v301_v30, 1  ;;  %v501_v31 = vsel %vm118_vm0, %v465_v29, 0.0 }
 0x17b   :  { %v2152_v21 = vsel %vm323_vm4, %v1679_v41, 0.0  ;;  %502 = vadd.xlane.f32.xlu0 %v501_v31  ;;  %v2170_v37 = vpop.permute.xlu0 %291  ;;  %vm314_vm4 = vcmp.eq.s32.totalorder %v2114_v25, 1 }
 0x17c   :  { %v467_v38 = vmul.f32 %v2152_v21, %v2152_v21 }
 0x17d   :  { %v307_v20 = vpop.permute.xlu1 %306 }
 0x17e   :  { %vm325_vm6 = vcmp.eq.s32.totalorder %v307_v20, 1  ;;  %v507_v51 = vsel %vm118_vm0, %v467_v38, 0.0 }
 0x17f   :  { %v2166_v41 = vsel %vm325_vm6, %v1692_v49, 0.0  ;;  %508 = vadd.xlane.f32.xlu0 %v507_v51  ;;  %v2176_v59 = vpop.permute.xlu0 %297 }
 0x180   :  { %v469_v24 = vmul.f32 %v2166_v41, %v2166_v41 }
 0x182   :  { %v513_v35 = vsel %vm118_vm0, %v469_v24, 0.0 }
 0x183   :  { %514 = vadd.xlane.f32.xlu0 %v513_v35  ;;  %v2178_v7 = vpop.permute.xlu0 %303 }
 0x187   :  { %690 = vadd.xlane.f32.xlu0 %v689_v9 }
 0x192   :  { %v661_v49 = vpop.xlane.xlu0 %660 }
 0x193   :  { %1337 = vrsqrt.f32 %v661_v49  ;;  %vm725_vm7 = vcmp.eq.f32.partialorder %v661_v49, inf  ;;  %v728_v17 = vand.u32 2147483648, %v661_v49  ;;  %vm727_vm8 = vcmp.eq.f32.partialorder %v661_v49, 0.0 }
 0x196   :  { %v667_v2 = vpop.xlane.xlu0 %666 }
 0x197   :  { %1339 = vrsqrt.f32 %v667_v2  ;;  %vm739_vm9 = vcmp.eq.f32.partialorder %v667_v2, inf  ;;  %v742_v31 = vand.u32 2147483648, %v667_v2  ;;  %vm741_vm10 = vcmp.eq.f32.partialorder %v667_v2, 0.0 }
 0x19a   :  { %v673_v8 = vpop.xlane.xlu0 %672 }
 0x19b   :  { %1341 = vrsqrt.f32 %v673_v8  ;;  %vm753_vm11 = vcmp.eq.f32.partialorder %v673_v8, inf  ;;  %v756_v35 = vand.u32 2147483648, %v673_v8  ;;  %vm755_vm12 = vcmp.eq.f32.partialorder %v673_v8, 0.0 }
 0x19d   :  { %v1338_v4 = vpop.eup %1337 }
 0x19e   :  { %v724_v27 = vmul.f32 %v1338_v4, %v661_v49  ;;  %v679_v11 = vpop.xlane.xlu0 %678  ;;  %v67_v4 = vld [vmem:[%s2630_s1 + $0x68] sm:$0xff] }
 0x19f   :  { %1343 = vrsqrt.f32 %v679_v11  ;;  %vm767_vm14 = vcmp.eq.f32.partialorder %v679_v11, inf  ;;  %vm769_vm3 = vcmp.eq.f32.partialorder %v679_v11, 0.0 }
 0x1a0   :  { %v726_v39 = vsel %vm725_vm7, %v661_v49, %v724_v27  ;;  %vm316_vm7 = vcmp.eq.s32.totalorder %v2122_v6, 1 }
 0x1a1   :  { %v1340_v0 = vpop.eup %1339  ;;  %v729_v43 = vsel %vm727_vm8, %v728_v17, %v726_v39  ;;  %vm318_vm8 = vcmp.eq.s32.totalorder %v2131_v1, 1  ;;  %v1456_v1 = vld [vmem:[%s2629_s0 + $0x38] sm:$0xff] }
 0x1a2   :  { %v940_v26 = vmax.f32 %v729_v43, 1e-12  ;;  %v738_v29 = vmul.f32 %v1340_v0, %v667_v2  ;;  %v685_v30 = vpop.xlane.xlu0 %684 }
 0x1a3   :  { %1345 = vrsqrt.f32 %v685_v30  ;;  %vm781_vm5 = vcmp.eq.f32.partialorder %v685_v30, inf  ;;  %vm783_vm6 = vcmp.eq.f32.partialorder %v685_v30, 0.0 }
 0x1a4   :  { %1347 = vrcp.f32 %v940_v26  ;;  %v740_v14 = vsel %vm739_vm9, %v667_v2, %v738_v29  ;;  %v770_v2 = vand.u32 2147483648, %v679_v11  ;;  %vm320_vm9 = vcmp.eq.s32.totalorder %v2170_v37, 1 }
 0x1a5   :  { %v1342_v38 = vpop.eup %1341  ;;  %v743_v20 = vsel %vm741_vm10, %v742_v31, %v740_v14  ;;  %v1453_v14 = vld [vmem:[%s2629_s0] sm:$0xff] }
 0x1a6   :  { %v942_v51 = vmax.f32 %v743_v20, 1e-12  ;;  %v752_v24 = vmul.f32 %v1342_v38, %v673_v8  ;;  %v2191_v38 = vsel %vm311_vm13, %v1453_v14, 0.0 }
 0x1a8   :  { %1349 = vrcp.f32 %v942_v51  ;;  %v754_v54 = vsel %vm753_vm11, %v673_v8, %v752_v24  ;;  %v784_v24 = vand.u32 2147483648, %v685_v30 }
 0x1a9   :  { %v1344_v9 = vpop.eup %1343  ;;  %v757_v49 = vsel %vm755_vm12, %v756_v35, %v754_v54  ;;  %vm322_vm12 = vcmp.eq.s32.totalorder %v2176_v59, 1 }
 0x1aa   :  { %v944_v27 = vmax.f32 %v757_v49, 1e-12  ;;  %v766_v17 = vmul.f32 %v1344_v9, %v679_v11  ;;  %v416_v39 = vpop.permute.xlu0 %415 }
 0x1ab   :  { %vm436_vm2 = vcmp.eq.s32.totalorder %v416_v39, 1 }
 0x1ac   :  { %1351 = vrcp.f32 %v944_v27  ;;  %v768_v0 = vsel %vm767_vm14, %v679_v11, %v766_v17  ;;  %v2184_v43 = vsel %vm436_vm2, %v67_v4, 0.0  ;;  %v455_v4 = vmul.f32 %v2191_v38, %v2191_v38  ;;  %v1454_v17 = vld [vmem:[%s2629_s0 + $0x18] sm:$0xff] }
 0x1ad   :  { %v1346_v8 = vpop.eup %1345  ;;  %v771_v26 = vsel %vm769_vm3, %v770_v2, %v768_v0  ;;  %v644_v29 = vmul.f32 %v2184_v43, %v2184_v43  ;;  %vm324_vm2 = vcmp.eq.s32.totalorder %v2178_v7, 1  ;;  %v1459_v7 = vld [vmem:[%s2629_s0 + $0x68] sm:$0xff] }
 0x1ae   :  { %v1348_v31 = vpop.eup %1347  ;;  %v946_v33 = vmax.f32 %v771_v26, 1e-12  ;;  %v780_v20 = vmul.f32 %v1346_v8, %v685_v30  ;;  %v658_v51 = vpop.xlane.xlu1 %657  ;;  %v471_v8 = vsel %vm118_vm0, %v455_v4, 0.0 }
 0x1af   :  { %v1012_v11 = vmul.f32 %v1348_v31, %v2017_v57  ;;  %1353 = vrsqrt.f32 %v658_v51  ;;  %v686_v49 = vsel %vm118_vm0, %v644_v29, 0.0  ;;  %v2203_v57 = vsel %vm314_vm4, %v1454_v17, 0.0  ;;  %v1455_v29 = vld [vmem:[%s2629_s0 + $0x28] sm:$0xff] }
 0x1b0   :  { %1355 = vrcp.f32 %v946_v33  ;;  %v782_v35 = vsel %vm781_vm5, %v685_v30, %v780_v20  ;;  %687 = vadd.xlane.f32.xlu1 %v686_v49  ;;  %v458_v26 = vmul.f32 %v2203_v57, %v2203_v57  ;;  %v2214_v31 = vsel %vm316_vm7, %v1455_v29, 0.0 }
 0x1b1   :  { %v1305_v54 = vpack.c.bf16 %v1012_v11, %v1012_v11  ;;  %v785_v9 = vsel %vm783_vm6, %v784_v24, %v782_v35  ;;  %v460_v11 = vmul.f32 %v2214_v31, %v2214_v31  ;;  %v2229_v35 = vsel %vm318_vm8, %v1456_v1, 0.0 }
 0x1b2   :  { %v1350_v27 = vpop.eup %1349  ;;  %v948_v39 = vmax.f32 %v785_v9, 1e-12  ;;  %v664_v2 = vpop.xlane.xlu1 %663  ;;  %v480_v20 = vsel %vm118_vm0, %v458_v26, 0.0  ;;  %vm718_vm10 = vcmp.eq.f32.partialorder %v658_v51, inf  ;;  %v721_v49 = vand.u32 2147483648, %v658_v51  ;;  %v1457_v26 = vld [vmem:[%s2629_s0 + $0x48] sm:$0xff] }
 0x1b3   :  { %1197 = vst.msk [vmem:[#allocation4 + $0x10] sm:$0xf] %vm1120_vm15, %v1305_v54  ;;  %v1014_v30 = vmul.f32 %v1350_v27, %v2024_v62  ;;  %1357 = vrsqrt.f32 %v664_v2  ;;  %vm720_vm11 = vcmp.eq.f32.partialorder %v658_v51, 0.0  ;;  %vm732_vm13 = vcmp.eq.f32.partialorder %v664_v2, inf }
 0x1b4   :  { %1359 = vrcp.f32 %v948_v39  ;;  %472 = vadd.xlane.f32.xlu1 %v471_v8  ;;  %vm734_vm14 = vcmp.eq.f32.partialorder %v664_v2, 0.0 }
 0x1b5   :  { %v1307_v0 = vpack.c.bf16 %v1014_v30, %v1014_v30  ;;  %v486_v30 = vsel %vm118_vm0, %v460_v11, 0.0 }
 0x1b6   :  { %v1352_v25 = vpop.eup %1351  ;;  %v2216_v6 = vpop.xlane.xlu1 %669 }
 0x1b7   :  { %1199 = vst.msk [vmem:[#allocation4 + $0x18] sm:$0xf] %vm1120_vm15, %v1307_v0  ;;  %v1016_v62 = vmul.f32 %v1352_v25, %v2032_v3  ;;  %1361 = vrsqrt.f32 %v2216_v6  ;;  %v462_v0 = vmul.f32 %v2229_v35, %v2229_v35  ;;  %v2247_v25 = vpop.permute.xlu0 %421  ;;  %vm746_vm3 = vcmp.eq.f32.partialorder %v2216_v6, inf }
 0x1b8   :  { %481 = vadd.xlane.f32.xlu1 %v480_v20  ;;  %vm748_vm4 = vcmp.eq.f32.partialorder %v2216_v6, 0.0  ;;  %vm438_vm8 = vcmp.eq.s32.totalorder %v2247_v25, 1 }
 0x1b9   :  { %v1354_v14 = vpop.eup %1353  ;;  %v1309_v33 = vpack.c.bf16 %v1016_v62, %v1016_v62  ;;  %v492_v1 = vsel %vm118_vm0, %v462_v0, 0.0 }
 0x1ba   :  { %v1356_v24 = vpop.eup %1355  ;;  %v717_v54 = vmul.f32 %v1354_v14, %v658_v51  ;;  %v2231_v3 = vpop.xlane.xlu1 %675 }
 0x1bb   :  { %1201 = vst.msk [vmem:[#allocation4 + $0x20] sm:$0xf] %vm1120_vm15, %v1309_v33  ;;  %v1018_v9 = vmul.f32 %v1356_v24, %v2040_v10  ;;  %1363 = vrsqrt.f32 %v2231_v3  ;;  %v2244_v10 = vsel %vm320_vm9, %v1457_v26, 0.0  ;;  %v735_v33 = vand.u32 2147483648, %v664_v2 }
 0x1bc   :  { %v719_v4 = vsel %vm718_vm10, %v658_v51, %v717_v54  ;;  %487 = vadd.xlane.f32.xlu1 %v486_v30  ;;  %v464_v54 = vmul.f32 %v2244_v10, %v2244_v10  ;;  %vm760_vm6 = vcmp.eq.f32.partialorder %v2231_v3, inf  ;;  %vm762_vm7 = vcmp.eq.f32.partialorder %v2231_v3, 0.0 }
 0x1bd   :  { %v1358_v27 = vpop.eup %1357  ;;  %v1311_v17 = vpack.c.bf16 %v1018_v9, %v1018_v9  ;;  %v722_v39 = vsel %vm720_vm11, %v721_v49, %v719_v4  ;;  %v1458_v9 = vld [vmem:[%s2629_s0 + $0x58] sm:$0xff] }
 0x1be   :  { %v1360_v8 = vpop.eup %1359  ;;  %v939_v51 = vmax.f32 %v722_v39, 1e-12  ;;  %v731_v29 = vmul.f32 %v1358_v27, %v664_v2  ;;  %v2249_v62 = vpop.xlane.xlu1 %681  ;;  %v498_v30 = vsel %vm118_vm0, %v464_v54, 0.0 }
 0x1bf   :  { %1203 = vst.msk [vmem:[#allocation4 + $0x28] sm:$0xf] %vm1120_vm15, %v1311_v17  ;;  %v1020_v14 = vmul.f32 %v1360_v8, %v2048_v15  ;;  %1365 = vrsqrt.f32 %v2249_v62  ;;  %v2262_v15 = vsel %vm322_vm12, %v1458_v9, 0.0  ;;  %v310_v27 = vpop.permute.xlu0 %309  ;;  %v2277_v8 = vsel %vm324_vm2, %v1459_v7, 0.0 }
 0x1c0   :  { %1367 = vrcp.f32 %v939_v51  ;;  %v733_v37 = vsel %vm732_vm13, %v664_v2, %v731_v29  ;;  %493 = vadd.xlane.f32.xlu1 %v492_v1  ;;  %v749_v2 = vand.u32 2147483648, %v2216_v6  ;;  %v466_v0 = vmul.f32 %v2262_v15, %v2262_v15 }
 0x1c1   :  { %v1362_v20 = vpop.eup %1361  ;;  %v1313_v11 = vpack.c.bf16 %v1020_v14, %v1020_v14  ;;  %v736_v24 = vsel %vm734_vm14, %v735_v33, %v733_v37  ;;  %vm326_vm5 = vcmp.eq.s32.totalorder %v310_v27, 1  ;;  %vm774_vm9 = vcmp.eq.f32.partialorder %v2249_v62, inf }
 0x1c2   :  { %v941_v49 = vmax.f32 %v736_v24, 1e-12  ;;  %v745_v4 = vmul.f32 %v1362_v20, %v2216_v6  ;;  %v504_v37 = vsel %vm118_vm0, %v466_v0, 0.0  ;;  %v468_v20 = vmul.f32 %v2277_v8, %v2277_v8  ;;  %v1460_v24 = vld [vmem:[%s2629_s0 + $0x78] sm:$0xff] }
 0x1c3   :  { %1205 = vst.msk [vmem:[#allocation4 + $0x30] sm:$0xf] %vm1120_vm15, %v1313_v11  ;;  %v2290_v1 = vsel %vm326_vm5, %v1460_v24, 0.0  ;;  %vm776_vm10 = vcmp.eq.f32.partialorder %v2249_v62, 0.0 }
 0x1c4   :  { %1369 = vrcp.f32 %v941_v49  ;;  %v747_v17 = vsel %vm746_vm3, %v2216_v6, %v745_v4  ;;  %499 = vadd.xlane.f32.xlu1 %v498_v30  ;;  %v763_v6 = vand.u32 2147483648, %v2231_v3  ;;  %v69_v49 = vld [vmem:[%s2630_s1 + $0x78] sm:$0xff]  ;;  %v777_v4 = vand.u32 2147483648, %v2249_v62 }
 0x1c5   :  { %v1364_v59 = vpop.eup %1363  ;;  %v750_v39 = vsel %vm748_vm4, %v749_v2, %v747_v17  ;;  %v2305_v30 = vsel %vm438_vm8, %v69_v49, 0.0 }
 0x1c6   :  { %v943_v26 = vmax.f32 %v750_v39, 1e-12  ;;  %v759_v51 = vmul.f32 %v1364_v59, %v2231_v3  ;;  %v510_v59 = vsel %vm118_vm0, %v468_v20, 0.0 }
 0x1c8   :  { %1371 = vrcp.f32 %v943_v26  ;;  %v761_v29 = vsel %vm760_vm6, %v2231_v3, %v759_v51  ;;  %505 = vadd.xlane.f32.xlu1 %v504_v37  ;;  %v646_v26 = vmul.f32 %v2305_v30, %v2305_v30 }
 0x1c9   :  { %v1366_v14 = vpop.eup %1365  ;;  %v764_v33 = vsel %vm762_vm7, %v763_v6, %v761_v29 }
 0x1ca   :  { %v1368_v11 = vpop.eup %1367  ;;  %v945_v54 = vmax.f32 %v764_v33, 1e-12  ;;  %v773_v9 = vmul.f32 %v1366_v14, %v2249_v62  ;;  %v692_v14 = vsel %vm118_vm0, %v646_v26, 0.0 }
 0x1cb   :  { %v1011_v3 = vmul.f32 %v1368_v11, %v2057_v47  ;;  %v470_v47 = vmul.f32 %v2290_v1, %v2290_v1 }
 0x1cc   :  { %1373 = vrcp.f32 %v945_v54  ;;  %v775_v2 = vsel %vm774_vm9, %v2249_v62, %v773_v9  ;;  %511 = vadd.xlane.f32.xlu1 %v510_v59 }
 0x1cd   :  { %v1304_v27 = vpack.c.bf16 %v1011_v3, %v1011_v3  ;;  %v778_v17 = vsel %vm776_vm10, %v777_v4, %v775_v2  ;;  %v516_v62 = vsel %vm118_vm0, %v470_v47, 0.0 }
 0x1ce   :  { %v1370_v39 = vpop.eup %1369  ;;  %v947_v25 = vmax.f32 %v778_v17, 1e-12 }
 0x1cf   :  { %1196 = vst.msk [vmem:[#allocation4 + $0xc] sm:$0xf] %vm1120_vm15, %v1304_v27  ;;  %v1013_v0 = vmul.f32 %v1370_v39, %v2064_v19 }
 0x1d0   :  { %1375 = vrcp.f32 %v947_v25  ;;  %517 = vadd.xlane.f32.xlu1 %v516_v62 }
 0x1d1   :  { %v1306_v7 = vpack.c.bf16 %v1013_v0, %v1013_v0 }
 0x1d2   :  { %v1372_v51 = vpop.eup %1371 }
 0x1d3   :  { %1198 = vst.msk [vmem:[#allocation4 + $0x14] sm:$0xf] %vm1120_vm15, %v1306_v7  ;;  %v1015_v6 = vmul.f32 %v1372_v51, %v2072_v56 }
 0x1d4   :  { %693 = vadd.xlane.f32.xlu1 %v692_v14 }
 0x1d5   :  { %v1308_v29 = vpack.c.bf16 %v1015_v6, %v1015_v6 }
 0x1d6   :  { %v1374_v33 = vpop.eup %1373 }
 0x1d7   :  { %1200 = vst.msk [vmem:[#allocation4 + $0x1c] sm:$0xf] %vm1120_vm15, %v1308_v29  ;;  %v1017_v19 = vmul.f32 %v1374_v33, %v2080_v5 }
 0x1d9   :  { %v1310_v37 = vpack.c.bf16 %v1017_v19, %v1017_v19 }
 0x1da   :  { %v1376_v20 = vpop.eup %1375 }
 0x1db   :  { %1202 = vst.msk [vmem:[#allocation4 + $0x24] sm:$0xf] %vm1120_vm15, %v1310_v37  ;;  %v1019_v11 = vmul.f32 %v1376_v20, %v2090_v12  ;;  %v1461_v12 = vld [vmem:[%s2631_s2 + $0x8] sm:$0xff]  ;;  %v1463_v20 = vld [vmem:[%s2631_s2 + $0x20] sm:$0xff] }
 0x1dd   :  { %v1312_v24 = vpack.c.bf16 %v1019_v11, %v1019_v11 }
 0x1df   :  { %1204 = vst.msk [vmem:[#allocation4 + $0x2c] sm:$0xf] %vm1120_vm15, %v1312_v24 }
 0x1e8   :  { %v476_v54 = vpop.xlane.xlu0 %475 }
 0x1e9   :  { %1377 = vrsqrt.f32 %v476_v54  ;;  %vm528_vm0 = vcmp.eq.f32.partialorder %v476_v54, inf  ;;  %v531_v4 = vand.u32 2147483648, %v476_v54  ;;  %vm530_vm11 = vcmp.eq.f32.partialorder %v476_v54, 0.0 }
 0x1ec   :  { %v479_v56 = vpop.xlane.xlu0 %478 }
 0x1ed   :  { %1379 = vrsqrt.f32 %v479_v56  ;;  %vm535_vm12 = vcmp.eq.f32.partialorder %v479_v56, inf  ;;  %v538_v25 = vand.u32 2147483648, %v479_v56  ;;  %vm537_vm13 = vcmp.eq.f32.partialorder %v479_v56, 0.0 }
 0x1f3   :  { %v1378_v9 = vpop.eup %1377 }
 0x1f4   :  { %v527_v3 = vmul.f32 %v1378_v9, %v476_v54  ;;  %v485_v49 = vpop.xlane.xlu0 %484 }
 0x1f5   :  { %1381 = vrsqrt.f32 %v485_v49  ;;  %vm549_vm14 = vcmp.eq.f32.partialorder %v485_v49, inf  ;;  %v552_v33 = vand.u32 2147483648, %v485_v49  ;;  %vm551_vm2 = vcmp.eq.f32.partialorder %v485_v49, 0.0 }
 0x1f6   :  { %v529_v5 = vsel %vm528_vm0, %v476_v54, %v527_v3 }
 0x1f7   :  { %v1380_v2 = vpop.eup %1379  ;;  %v532_v27 = vsel %vm530_vm11, %v531_v4, %v529_v5 }
 0x1f8   :  { %v808_v17 = vmul.f32 %v1461_v12, %v532_v27  ;;  %v841_v59 = vmul.f32 %v532_v27, %v1828_v55  ;;  %v889_v47 = vmax.f32 %v532_v27, 1e-12  ;;  %v534_v39 = vmul.f32 %v1380_v2, %v479_v56  ;;  %v1462_v55 = vld [vmem:[%s2631_s2 + $0x10] sm:$0xff] }
 0x1fa   :  { %825 = vst.msk [vmem:[%s2634_s5 + $0x8] sm:$0xff] %vm823_vm1, %v808_v17  ;;  %857 = vst.msk [vmem:[%s2635_s6 + $0x8] sm:$0xff] %vm823_vm1, %v841_v59  ;;  %1383 = vrcp.f32 %v889_v47  ;;  %v536_v0 = vsel %vm535_vm12, %v479_v56, %v534_v39  ;;  %v1464_v39 = vld [vmem:[%s2631_s2 + $0x30] sm:$0xff] }
 0x1fb   :  { %v539_v7 = vsel %vm537_vm13, %v538_v25, %v536_v0 }
 0x1fc   :  { %v809_v62 = vmul.f32 %v1462_v55, %v539_v7  ;;  %v842_v26 = vmul.f32 %v539_v7, %v1809_v44  ;;  %v890_v51 = vmax.f32 %v539_v7, 1e-12  ;;  %v491_v6 = vpop.xlane.xlu0 %490 }
 0x1fd   :  { %1385 = vrsqrt.f32 %v491_v6  ;;  %vm563_vm3 = vcmp.eq.f32.partialorder %v491_v6, inf  ;;  %v566_v12 = vand.u32 2147483648, %v491_v6  ;;  %vm565_vm4 = vcmp.eq.f32.partialorder %v491_v6, 0.0 }
 0x1fe   :  { %826 = vst.msk [vmem:[%s2634_s5 + $0x10] sm:$0xff] %vm823_vm1, %v809_v62  ;;  %858 = vst.msk [vmem:[%s2635_s6 + $0x10] sm:$0xff] %vm823_vm1, %v842_v26  ;;  %1387 = vrcp.f32 %v890_v51 }
 0x1ff   :  { %v1382_v29 = vpop.eup %1381 }
 0x200   :  { %v548_v14 = vmul.f32 %v1382_v29, %v485_v49 }
 0x202   :  { %v550_v19 = vsel %vm549_vm14, %v485_v49, %v548_v14 }
 0x203   :  { %v553_v44 = vsel %vm551_vm2, %v552_v33, %v550_v19 }
 0x204   :  { %v1384_v37 = vpop.eup %1383  ;;  %v811_v11 = vmul.f32 %v1463_v20, %v553_v44  ;;  %v844_v24 = vmul.f32 %v553_v44, %v1844_v63  ;;  %v892_v54 = vmax.f32 %v553_v44, 1e-12  ;;  %v497_v56 = vpop.xlane.xlu0 %496  ;;  %v1465_v44 = vld [vmem:[%s2631_s2 + $0x40] sm:$0xff] }
 0x205   :  { %v907_v9 = vmul.f32 14.285714, %v1384_v37  ;;  %1389 = vrsqrt.f32 %v497_v56  ;;  %vm577_vm5 = vcmp.eq.f32.partialorder %v497_v56, inf  ;;  %vm579_vm6 = vcmp.eq.f32.partialorder %v497_v56, 0.0 }
 0x206   :  { %828 = vst.msk [vmem:[%s2634_s5 + $0x20] sm:$0xff] %vm823_vm1, %v811_v11  ;;  %860 = vst.msk [vmem:[%s2635_s6 + $0x20] sm:$0xff] %vm823_vm1, %v844_v24  ;;  %1391 = vrcp.f32 %v892_v54 }
 0x207   :  { %v1386_v3 = vpop.eup %1385  ;;  %v985_v49 = vmul.f32 %v907_v9, %v2104_v40 }
 0x208   :  { %v1388_v4 = vpop.eup %1387  ;;  %v562_v63 = vmul.f32 %v1386_v3, %v491_v6  ;;  %v503_v5 = vpop.xlane.xlu0 %502 }
 0x209   :  { %v1286_v2 = vpack.c.bf16 %v985_v49, %v985_v49  ;;  %v909_v27 = vmul.f32 14.285714, %v1388_v4  ;;  %1393 = vrsqrt.f32 %v503_v5  ;;  %vm591_vm7 = vcmp.eq.f32.partialorder %v503_v5, inf  ;;  %v1466_v4 = vld [vmem:[%s2631_s2 + $0x50] sm:$0xff] }
 0x20a   :  { %v564_v17 = vsel %vm563_vm3, %v491_v6, %v562_v63  ;;  %v580_v6 = vand.u32 2147483648, %v497_v56  ;;  %v594_v3 = vand.u32 2147483648, %v503_v5  ;;  %vm593_vm8 = vcmp.eq.f32.partialorder %v503_v5, 0.0 }
 0x20b   :  { %1122 = vst.msk [vmem:[#allocation2 + $0x4] sm:$0xf] %vm1120_vm15, %v1286_v2  ;;  %v986_v59 = vmul.f32 %v909_v27, %v2110_v32  ;;  %v567_v47 = vsel %vm565_vm4, %v566_v12, %v564_v17 }
 0x20c   :  { %v813_v40 = vmul.f32 %v1464_v39, %v567_v47  ;;  %v846_v25 = vmul.f32 %v567_v47, %v1860_v22  ;;  %v894_v0 = vmax.f32 %v567_v47, 1e-12  ;;  %v509_v7 = vpop.xlane.xlu0 %508 }
 0x20d   :  { %v1287_v55 = vpack.c.bf16 %v986_v59, %v986_v59  ;;  %1395 = vrsqrt.f32 %v509_v7  ;;  %vm605_vm9 = vcmp.eq.f32.partialorder %v509_v7, inf  ;;  %v608_v59 = vand.u32 2147483648, %v509_v7 }
 0x20e   :  { %830 = vst.msk [vmem:[%s2634_s5 + $0x30] sm:$0xff] %vm823_vm1, %v813_v40  ;;  %862 = vst.msk [vmem:[%s2635_s6 + $0x30] sm:$0xff] %vm823_vm1, %v846_v25  ;;  %1397 = vrcp.f32 %v894_v0  ;;  %vm607_vm10 = vcmp.eq.f32.partialorder %v509_v7, 0.0  ;;  %v1467_v40 = vld [vmem:[%s2631_s2 + $0x60] sm:$0xff] }
 0x20f   :  { %v1390_v32 = vpop.eup %1389  ;;  %1123 = vst.msk [vmem:[#allocation2 + $0x8] sm:$0xf] %vm1120_vm15, %v1287_v55 }
 0x210   :  { %v1392_v62 = vpop.eup %1391  ;;  %v576_v22 = vmul.f32 %v1390_v32, %v497_v56  ;;  %v515_v26 = vpop.xlane.xlu0 %514 }
 0x211   :  { %v913_v51 = vmul.f32 14.285714, %v1392_v62  ;;  %1399 = vrsqrt.f32 %v515_v26  ;;  %vm619_vm0 = vcmp.eq.f32.partialorder %v515_v26, inf  ;;  %vm621_vm11 = vcmp.eq.f32.partialorder %v515_v26, 0.0 }
 0x212   :  { %v578_v29 = vsel %vm577_vm5, %v497_v56, %v576_v22  ;;  %v622_v22 = vand.u32 2147483648, %v515_v26 }
 0x213   :  { %v1394_v14 = vpop.eup %1393  ;;  %v988_v33 = vmul.f32 %v913_v51, %v2118_v50  ;;  %v581_v19 = vsel %vm579_vm6, %v580_v6, %v578_v29  ;;  %v1468_v6 = vld [vmem:[%s2631_s2 + $0x70] sm:$0xff] }
 0x214   :  { %v815_v37 = vmul.f32 %v1465_v44, %v581_v19  ;;  %v848_v20 = vmul.f32 %v581_v19, %v1876_v36  ;;  %v896_v11 = vmax.f32 %v581_v19, 1e-12  ;;  %v590_v24 = vmul.f32 %v1394_v14, %v503_v5  ;;  %v2377_v54 = vpop.xlane.xlu0 %690 }
 0x215   :  { %v1289_v9 = vpack.c.bf16 %v988_v33, %v988_v33  ;;  %1401 = vrsqrt.f32 %v2377_v54  ;;  %vm795_vm12 = vcmp.eq.f32.partialorder %v2377_v54, inf  ;;  %vm797_vm13 = vcmp.eq.f32.partialorder %v2377_v54, 0.0 }
 0x216   :  { %832 = vst.msk [vmem:[%s2634_s5 + $0x40] sm:$0xff] %vm823_vm1, %v815_v37  ;;  %864 = vst.msk [vmem:[%s2635_s6 + $0x40] sm:$0xff] %vm823_vm1, %v848_v20  ;;  %1403 = vrcp.f32 %v896_v11  ;;  %v592_v36 = vsel %vm591_vm7, %v503_v5, %v590_v24 }
 0x217   :  { %v1396_v50 = vpop.eup %1395  ;;  %1125 = vst.msk [vmem:[#allocation2 + $0x10] sm:$0xf] %vm1120_vm15, %v1289_v9  ;;  %v595_v56 = vsel %vm593_vm8, %v594_v3, %v592_v36 }
 0x218   :  { %v1398_v49 = vpop.eup %1397  ;;  %v817_v63 = vmul.f32 %v1466_v4, %v595_v56  ;;  %v850_v2 = vmul.f32 %v595_v56, %v1897_v48  ;;  %v898_v27 = vmax.f32 %v595_v56, 1e-12  ;;  %v604_v12 = vmul.f32 %v1396_v50, %v509_v7 }
 0x219   :  { %v917_v17 = vmul.f32 14.285714, %v1398_v49 }
 0x21a   :  { %834 = vst.msk [vmem:[%s2634_s5 + $0x50] sm:$0xff] %vm823_vm1, %v817_v63  ;;  %866 = vst.msk [vmem:[%s2635_s6 + $0x50] sm:$0xff] %vm823_vm1, %v850_v2  ;;  %1405 = vrcp.f32 %v898_v27  ;;  %v606_v5 = vsel %vm605_vm9, %v509_v7, %v604_v12 }
 0x21b   :  { %v1400_v47 = vpop.eup %1399  ;;  %v990_v48 = vmul.f32 %v917_v17, %v2127_v28  ;;  %v609_v39 = vsel %vm607_vm10, %v608_v59, %v606_v5 }
 0x21c   :  { %v819_v25 = vmul.f32 %v1467_v40, %v609_v39  ;;  %v852_v0 = vmul.f32 %v609_v39, %v1918_v60  ;;  %v900_v55 = vmax.f32 %v609_v39, 1e-12  ;;  %v618_v32 = vmul.f32 %v1400_v47, %v515_v26 }
 0x21d   :  { %v1291_v62 = vpack.c.bf16 %v990_v48, %v990_v48 }
 0x21e   :  { %836 = vst.msk [vmem:[%s2634_s5 + $0x60] sm:$0xff] %vm823_vm1, %v819_v25  ;;  %868 = vst.msk [vmem:[%s2635_s6 + $0x60] sm:$0xff] %vm823_vm1, %v852_v0  ;;  %1407 = vrcp.f32 %v900_v55  ;;  %v620_v28 = vsel %vm619_vm0, %v515_v26, %v618_v32  ;;  %v798_v26 = vand.u32 2147483648, %v2377_v54 }
 0x21f   :  { %v1402_v7 = vpop.eup %1401  ;;  %1127 = vst.msk [vmem:[#allocation2 + $0x18] sm:$0xf] %vm1120_vm15, %v1291_v62  ;;  %v623_v60 = vsel %vm621_vm11, %v622_v22, %v620_v28 }
 0x220   :  { %v1404_v51 = vpop.eup %1403  ;;  %v821_v29 = vmul.f32 %v1468_v6, %v623_v60  ;;  %v854_v14 = vmul.f32 %v623_v60, %v1933_v18  ;;  %v902_v33 = vmax.f32 %v623_v60, 1e-12  ;;  %v794_v19 = vmul.f32 %v1402_v7, %v2377_v54  ;;  %v1469_v60 = vld [vmem:[%s2631_s2] sm:$0xff] }
 0x221   :  { %v921_v44 = vmul.f32 14.285714, %v1404_v51 }
 0x222   :  { %838 = vst.msk [vmem:[%s2634_s5 + $0x70] sm:$0xff] %vm823_vm1, %v821_v29  ;;  %870 = vst.msk [vmem:[%s2635_s6 + $0x70] sm:$0xff] %vm823_vm1, %v854_v14  ;;  %1409 = vrcp.f32 %v902_v33  ;;  %v796_v18 = vsel %vm795_vm12, %v2377_v54, %v794_v19 }
 0x223   :  { %v992_v37 = vmul.f32 %v921_v44, %v2140_v23  ;;  %v799_v20 = vsel %vm797_vm13, %v798_v26, %v796_v18  ;;  %v1470_v18 = vld [vmem:[%s2631_s2 + $0x18] sm:$0xff] }
 0x224   :  { %v1406_v11 = vpop.eup %1405  ;;  %v950_v24 = vmax.f32 %v799_v20, 1e-12 }
 0x225   :  { %v1293_v9 = vpack.c.bf16 %v992_v37, %v992_v37  ;;  %v925_v3 = vmul.f32 14.285714, %v1406_v11 }
 0x226   :  { %1411 = vrcp.f32 %v950_v24 }
 0x227   :  { %1129 = vst.msk [vmem:[#allocation2 + $0x20] sm:$0xf] %vm1120_vm15, %v1293_v9  ;;  %v994_v36 = vmul.f32 %v925_v3, %v2146_v42 }
 0x228   :  { %v1408_v50 = vpop.eup %1407 }
 0x229   :  { %v1295_v56 = vpack.c.bf16 %v994_v36, %v994_v36  ;;  %v929_v49 = vmul.f32 14.285714, %v1408_v50 }
 0x22b   :  { %1131 = vst.msk [vmem:[#allocation2 + $0x28] sm:$0xf] %vm1120_vm15, %v1295_v56  ;;  %v996_v4 = vmul.f32 %v929_v49, %v2152_v21  ;;  %v1471_v49 = vld [vmem:[%s2631_s2 + $0x28] sm:$0xff] }
 0x22c   :  { %v1410_v54 = vpop.eup %1409 }
 0x22d   :  { %v1297_v63 = vpack.c.bf16 %v996_v4, %v996_v4  ;;  %v933_v23 = vmul.f32 14.285714, %v1410_v54 }
 0x22f   :  { %1133 = vst.msk [vmem:[#allocation2 + $0x30] sm:$0xf] %vm1120_vm15, %v1297_v63  ;;  %v998_v2 = vmul.f32 %v933_v23, %v2166_v41 }
 0x230   :  { %v1412_v27 = vpop.eup %1411 }
 0x231   :  { %v1299_v12 = vpack.c.bf16 %v998_v2, %v998_v2  ;;  %v1022_v17 = vmul.f32 %v1412_v27, %v2163_v52 }
 0x233   :  { %1135 = vst.msk [vmem:[#allocation2 + $0x38] sm:$0xf] %vm1120_vm15, %v1299_v12  ;;  %v1315_v42 = vpack.c.bf16 %v1022_v17, %v1022_v17 }
 0x235   :  { %1207 = vst.msk [vmem:[#allocation4 + $0x38] sm:$0xf] %vm1120_vm15, %v1315_v42 }
 0x23d   :  { %v688_v59 = vpop.xlane.xlu1 %687 }
 0x23e   :  { %1413 = vrsqrt.f32 %v688_v59  ;;  %vm788_vm14 = vcmp.eq.f32.partialorder %v688_v59, inf  ;;  %v791_v41 = vand.u32 2147483648, %v688_v59  ;;  %vm790_vm2 = vcmp.eq.f32.partialorder %v688_v59, 0.0 }
 0x241   :  { %v473_v5 = vpop.xlane.xlu1 %472 }
 0x242   :  { %1415 = vrsqrt.f32 %v473_v5  ;;  %vm521_vm3 = vcmp.eq.f32.partialorder %v473_v5, inf  ;;  %v524_v62 = vand.u32 2147483648, %v473_v5  ;;  %vm523_vm4 = vcmp.eq.f32.partialorder %v473_v5, 0.0 }
 0x245   :  { %v482_v21 = vpop.xlane.xlu1 %481 }
 0x246   :  { %1417 = vrsqrt.f32 %v482_v21  ;;  %vm542_vm5 = vcmp.eq.f32.partialorder %v482_v21, inf  ;;  %v545_v19 = vand.u32 2147483648, %v482_v21  ;;  %vm544_vm6 = vcmp.eq.f32.partialorder %v482_v21, 0.0 }
 0x248   :  { %v1414_v47 = vpop.eup %1413 }
 0x249   :  { %v787_v48 = vmul.f32 %v1414_v47, %v688_v59  ;;  %v488_v39 = vpop.xlane.xlu1 %487 }
 0x24a   :  { %1419 = vrsqrt.f32 %v488_v39  ;;  %vm556_vm7 = vcmp.eq.f32.partialorder %v488_v39, inf  ;;  %v559_v3 = vand.u32 2147483648, %v488_v39  ;;  %vm558_vm8 = vcmp.eq.f32.partialorder %v488_v39, 0.0 }
 0x24b   :  { %v789_v40 = vsel %vm788_vm14, %v688_v59, %v787_v48 }
 0x24c   :  { %v1416_v52 = vpop.eup %1415  ;;  %v792_v25 = vsel %vm790_vm2, %v791_v41, %v789_v40 }
 0x24d   :  { %v949_v0 = vmax.f32 %v792_v25, 1e-12  ;;  %v520_v55 = vmul.f32 %v1416_v52, %v473_v5  ;;  %v494_v32 = vpop.xlane.xlu1 %493 }
 0x24e   :  { %1421 = vrsqrt.f32 %v494_v32  ;;  %vm570_vm9 = vcmp.eq.f32.partialorder %v494_v32, inf  ;;  %v573_v12 = vand.u32 2147483648, %v494_v32  ;;  %vm572_vm10 = vcmp.eq.f32.partialorder %v494_v32, 0.0 }
 0x24f   :  { %1423 = vrcp.f32 %v949_v0  ;;  %v522_v22 = vsel %vm521_vm3, %v473_v5, %v520_v55  ;;  %v1472_v5 = vld [vmem:[%s2631_s2 + $0x38] sm:$0xff] }
 0x250   :  { %v1418_v28 = vpop.eup %1417  ;;  %v525_v7 = vsel %vm523_vm4, %v524_v62, %v522_v22  ;;  %v1473_v62 = vld [vmem:[%s2631_s2 + $0x48] sm:$0xff] }
 0x251   :  { %v807_v51 = vmul.f32 %v1469_v60, %v525_v7  ;;  %v840_v6 = vmul.f32 %v525_v7, %v1812_v46  ;;  %v888_v29 = vmax.f32 %v525_v7, 1e-12  ;;  %v541_v14 = vmul.f32 %v1418_v28, %v482_v21  ;;  %v2446_v33 = vpop.xlane.xlu1 %499 }
 0x252   :  { %1425 = vrsqrt.f32 %v2446_v33  ;;  %vm584_vm0 = vcmp.eq.f32.partialorder %v2446_v33, inf  ;;  %v587_v52 = vand.u32 2147483648, %v2446_v33  ;;  %vm586_vm11 = vcmp.eq.f32.partialorder %v2446_v33, 0.0 }
 0x253   :  { %824 = vst.msk [vmem:[%s2634_s5] sm:$0xff] %vm823_vm1, %v807_v51  ;;  %856 = vst.msk [vmem:[%s2635_s6] sm:$0xff] %vm823_vm1, %v840_v6  ;;  %1427 = vrcp.f32 %v888_v29  ;;  %v543_v46 = vsel %vm542_vm5, %v482_v21, %v541_v14 }
 0x254   :  { %v1420_v44 = vpop.eup %1419  ;;  %v546_v26 = vsel %vm544_vm6, %v545_v19, %v543_v46 }
 0x255   :  { %v810_v37 = vmul.f32 %v1470_v18, %v546_v26  ;;  %v843_v20 = vmul.f32 %v546_v26, %v1825_v53  ;;  %v891_v11 = vmax.f32 %v546_v26, 1e-12  ;;  %v555_v24 = vmul.f32 %v1420_v44, %v488_v39  ;;  %v2461_v9 = vpop.xlane.xlu1 %505  ;;  %v1474_v44 = vld [vmem:[%s2631_s2 + $0x58] sm:$0xff] }
 0x256   :  { %1429 = vrsqrt.f32 %v2461_v9  ;;  %vm598_vm12 = vcmp.eq.f32.partialorder %v2461_v9, inf  ;;  %vm600_vm13 = vcmp.eq.f32.partialorder %v2461_v9, 0.0 }
 0x257   :  { %827 = vst.msk [vmem:[%s2634_s5 + $0x18] sm:$0xff] %vm823_vm1, %v810_v37  ;;  %859 = vst.msk [vmem:[%s2635_s6 + $0x18] sm:$0xff] %vm823_vm1, %v843_v20  ;;  %1431 = vrcp.f32 %v891_v11  ;;  %v557_v53 = vsel %vm556_vm7, %v488_v39, %v555_v24 }
 0x258   :  { %v1422_v36 = vpop.eup %1421  ;;  %v560_v50 = vsel %vm558_vm8, %v559_v3, %v557_v53 }
 0x259   :  { %v1424_v56 = vpop.eup %1423  ;;  %v812_v4 = vmul.f32 %v1471_v49, %v560_v50  ;;  %v845_v54 = vmul.f32 %v560_v50, %v1841_v61  ;;  %v893_v63 = vmax.f32 %v560_v50, 1e-12  ;;  %v569_v23 = vmul.f32 %v1422_v36, %v494_v32  ;;  %v2476_v2 = vpop.xlane.xlu1 %511  ;;  %v1475_v50 = vld [vmem:[%s2631_s2 + $0x68] sm:$0xff] }
 0x25a   :  { %v1021_v27 = vmul.f32 %v1424_v56, %v2184_v43  ;;  %1433 = vrsqrt.f32 %v2476_v2  ;;  %vm612_vm14 = vcmp.eq.f32.partialorder %v2476_v2, inf  ;;  %vm614_vm2 = vcmp.eq.f32.partialorder %v2476_v2, 0.0 }
 0x25b   :  { %829 = vst.msk [vmem:[%s2634_s5 + $0x28] sm:$0xff] %vm823_vm1, %v812_v4  ;;  %861 = vst.msk [vmem:[%s2635_s6 + $0x28] sm:$0xff] %vm823_vm1, %v845_v54  ;;  %1435 = vrcp.f32 %v893_v63  ;;  %v571_v61 = vsel %vm570_vm9, %v494_v32, %v569_v23 }
 0x25c   :  { %v1426_v17 = vpop.eup %1425  ;;  %v1314_v42 = vpack.c.bf16 %v1021_v27, %v1021_v27  ;;  %v574_v43 = vsel %vm572_vm10, %v573_v12, %v571_v61 }
 0x25d   :  { %v1428_v59 = vpop.eup %1427  ;;  %v814_v21 = vmul.f32 %v1472_v5, %v574_v43  ;;  %v847_v47 = vmul.f32 %v574_v43, %v1857_v16  ;;  %v895_v48 = vmax.f32 %v574_v43, 1e-12  ;;  %v583_v39 = vmul.f32 %v1426_v17, %v2446_v33  ;;  %v2493_v41 = vpop.xlane.xlu1 %517  ;;  %v1476_v17 = vld [vmem:[%s2631_s2 + $0x78] sm:$0xff] }
 0x25e   :  { %1206 = vst.msk [vmem:[#allocation4 + $0x34] sm:$0xf] %vm1120_vm15, %v1314_v42  ;;  %v905_v40 = vmul.f32 14.285714, %v1428_v59  ;;  %1437 = vrsqrt.f32 %v2493_v41  ;;  %vm626_vm3 = vcmp.eq.f32.partialorder %v2493_v41, inf  ;;  %vm628_vm4 = vcmp.eq.f32.partialorder %v2493_v41, 0.0 }
 0x25f   :  { %831 = vst.msk [vmem:[%s2634_s5 + $0x38] sm:$0xff] %vm823_vm1, %v814_v21  ;;  %863 = vst.msk [vmem:[%s2635_s6 + $0x38] sm:$0xff] %vm823_vm1, %v847_v47  ;;  %1439 = vrcp.f32 %v895_v48  ;;  %v585_v16 = vsel %vm584_vm0, %v2446_v33, %v583_v39 }
 0x260   :  { %v1430_v25 = vpop.eup %1429  ;;  %v984_v0 = vmul.f32 %v905_v40, %v2191_v38  ;;  %v588_v55 = vsel %vm586_vm11, %v587_v52, %v585_v16  ;;  %v601_v38 = vand.u32 2147483648, %v2461_v9 }
 0x261   :  { %v1432_v32 = vpop.eup %1431  ;;  %v816_v22 = vmul.f32 %v1473_v62, %v588_v55  ;;  %v849_v28 = vmul.f32 %v588_v55, %v1873_v34  ;;  %v897_v7 = vmax.f32 %v588_v55, 1e-12  ;;  %v597_v60 = vmul.f32 %v1430_v25, %v2461_v9  ;;  %v2516_v51 = vpop.xlane.xlu1 %693 }
 0x262   :  { %v1285_v6 = vpack.c.bf16 %v984_v0, %v984_v0  ;;  %v911_v29 = vmul.f32 14.285714, %v1432_v32  ;;  %1441 = vrsqrt.f32 %v2516_v51  ;;  %vm802_vm5 = vcmp.eq.f32.partialorder %v2516_v51, inf }
 0x263   :  { %833 = vst.msk [vmem:[%s2634_s5 + $0x48] sm:$0xff] %vm823_vm1, %v816_v22  ;;  %865 = vst.msk [vmem:[%s2635_s6 + $0x48] sm:$0xff] %vm823_vm1, %v849_v28  ;;  %1443 = vrcp.f32 %v897_v7  ;;  %v599_v34 = vsel %vm598_vm12, %v2461_v9, %v597_v60  ;;  %v615_v9 = vand.u32 2147483648, %v2476_v2  ;;  %v805_v48 = vand.u32 2147483648, %v2516_v51 }
 0x264   :  { %v1434_v14 = vpop.eup %1433  ;;  %1121 = vst.msk [vmem:[#allocation2] sm:$0xf] %vm1120_vm15, %v1285_v6  ;;  %v987_v33 = vmul.f32 %v911_v29, %v2203_v57  ;;  %v602_v19 = vsel %vm600_vm13, %v601_v38, %v599_v34  ;;  %vm804_vm6 = vcmp.eq.f32.partialorder %v2516_v51, 0.0 }
 0x265   :  { %v1436_v46 = vpop.eup %1435  ;;  %v818_v26 = vmul.f32 %v1474_v44, %v602_v19  ;;  %v851_v18 = vmul.f32 %v602_v19, %v1894_v45  ;;  %v899_v37 = vmax.f32 %v602_v19, 1e-12  ;;  %v611_v20 = vmul.f32 %v1434_v14, %v2476_v2 }
 0x266   :  { %v1288_v11 = vpack.c.bf16 %v987_v33, %v987_v33  ;;  %v915_v24 = vmul.f32 14.285714, %v1436_v46 }
 0x267   :  { %835 = vst.msk [vmem:[%s2634_s5 + $0x58] sm:$0xff] %vm823_vm1, %v818_v26  ;;  %867 = vst.msk [vmem:[%s2635_s6 + $0x58] sm:$0xff] %vm823_vm1, %v851_v18  ;;  %1445 = vrcp.f32 %v899_v37  ;;  %v613_v45 = vsel %vm612_vm14, %v2476_v2, %v611_v20  ;;  %v629_v2 = vand.u32 2147483648, %v2493_v41 }
 0x268   :  { %v1438_v57 = vpop.eup %1437  ;;  %1124 = vst.msk [vmem:[#allocation2 + $0xc] sm:$0xf] %vm1120_vm15, %v1288_v11  ;;  %v989_v3 = vmul.f32 %v915_v24, %v2214_v31  ;;  %v616_v53 = vsel %vm614_vm2, %v615_v9, %v613_v45 }
 0x269   :  { %v1440_v36 = vpop.eup %1439  ;;  %v820_v56 = vmul.f32 %v1475_v50, %v616_v53  ;;  %v853_v49 = vmul.f32 %v616_v53, %v1915_v58  ;;  %v901_v4 = vmax.f32 %v616_v53, 1e-12  ;;  %v625_v54 = vmul.f32 %v1438_v57, %v2493_v41 }
 0x26a   :  { %v1290_v63 = vpack.c.bf16 %v989_v3, %v989_v3  ;;  %v919_v23 = vmul.f32 14.285714, %v1440_v36 }
 0x26b   :  { %837 = vst.msk [vmem:[%s2634_s5 + $0x68] sm:$0xff] %vm823_vm1, %v820_v56  ;;  %869 = vst.msk [vmem:[%s2635_s6 + $0x68] sm:$0xff] %vm823_vm1, %v853_v49  ;;  %1447 = vrcp.f32 %v901_v4  ;;  %v627_v58 = vsel %vm626_vm3, %v2493_v41, %v625_v54 }
 0x26c   :  { %v1442_v31 = vpop.eup %1441  ;;  %1126 = vst.msk [vmem:[#allocation2 + $0x14] sm:$0xf] %vm1120_vm15, %v1290_v63  ;;  %v991_v27 = vmul.f32 %v919_v23, %v2229_v35  ;;  %v630_v12 = vsel %vm628_vm4, %v629_v2, %v627_v58 }
 0x26d   :  { %v1444_v61 = vpop.eup %1443  ;;  %v822_v42 = vmul.f32 %v1476_v17, %v630_v12  ;;  %v855_v43 = vmul.f32 %v630_v12, %v1931_v13  ;;  %v903_v59 = vmax.f32 %v630_v12, 1e-12  ;;  %v801_v5 = vmul.f32 %v1442_v31, %v2516_v51 }
 0x26e   :  { %v1292_v21 = vpack.c.bf16 %v991_v27, %v991_v27  ;;  %v923_v47 = vmul.f32 14.285714, %v1444_v61 }
 0x26f   :  { %839 = vst.msk [vmem:[%s2634_s5 + $0x78] sm:$0xff] %vm823_vm1, %v822_v42  ;;  %871 = vst.msk [vmem:[%s2635_s6 + $0x78] sm:$0xff] %vm823_vm1, %v855_v43  ;;  %1449 = vrcp.f32 %v903_v59  ;;  %v803_v13 = vsel %vm802_vm5, %v2516_v51, %v801_v5  ;;  %s1527_s5 = smov [#allocation2]  }
 0x270   :  { %1128 = vst.msk [vmem:[#allocation2 + $0x1c] sm:$0xf] %vm1120_vm15, %v1292_v21  ;;  %v993_v35 = vmul.f32 %v923_v47, %v2244_v10  ;;  %v806_v39 = vsel %vm804_vm6, %v805_v48, %v803_v13  ;;  %s1214_s6 = sshll.u32 %s1527_s5, 4  ;;  %s1215_s6 = int_to_ptr.vmem [resolvable:$true] %s1214_s6 }
 0x271   :  { %v1446_v41 = vpop.eup %1445  ;;  %v951_v40 = vmax.f32 %v806_v39, 1e-12  ;;  %s1477_s21 = scalar_lea.vmem %s1215_s6, 1024  ;;  %p1482_p1 = scmp.lt.s32.totalorder %s1215_s6, %s1215_s6 }
 0x272   :  { %v1294_v52 = vpack.c.bf16 %v993_v35, %v993_v35  ;;  %v927_v16 = vmul.f32 14.285714, %v1446_v41  ;;  %p1478_p0 = scmp.ne.s32.totalorder %s1215_s6, %s1477_s21  ;;  %p1483_p2 = scmp.lt.s32.totalorder %s1477_s21, %s1477_s21 }
 0x273   :  { %1451 = vrcp.f32 %v951_v40 }
 0x274   :  { %1130 = vst.msk [vmem:[#allocation2 + $0x24] sm:$0xf] %vm1120_vm15, %v1294_v52  ;;  %v995_v25 = vmul.f32 %v927_v16, %v2262_v15  ;;  %p1484_p3 = por %p1483_p2, %p1482_p1 }
 0x275   :  { %v1448_v0 = vpop.eup %1447 }
 0x276   :  { %v1296_v55 = vpack.c.bf16 %v995_v25, %v995_v25  ;;  %v931_v32 = vmul.f32 14.285714, %v1448_v0  ;;  %p1485_p4 = pnand %p1484_p3, %p1478_p0 }
 0x278   :  { %1132 = vst.msk [vmem:[#allocation2 + $0x2c] sm:$0xf] %vm1120_vm15, %v1296_v55  ;;  %v997_v62 = vmul.f32 %v931_v32, %v2277_v8 }
 0x279   :  { %v1450_v22 = vpop.eup %1449 }
 0x27a   :  { %v1298_v28 = vpack.c.bf16 %v997_v62, %v997_v62  ;;  %v935_v10 = vmul.f32 14.285714, %v1450_v22 }
 0x27c   :  { %1134 = vst.msk [vmem:[#allocation2 + $0x34] sm:$0xf] %vm1120_vm15, %v1298_v28  ;;  %v999_v7 = vmul.f32 %v935_v10, %v2290_v1 }
 0x27d   :  { %v1452_v60 = vpop.eup %1451 }
 0x27e   :  { %v1300_v15 = vpack.c.bf16 %v999_v7, %v999_v7  ;;  %v1023_v51 = vmul.f32 %v1452_v60, %v2305_v30 }
 0x280   :  { %1136 = vst.msk [vmem:[#allocation2 + $0x3c] sm:$0xf] %vm1120_vm15, %v1300_v15  ;;  %v1316_v6 = vpack.c.bf16 %v1023_v51, %v1023_v51 }
 0x281   :  { %1488 = shalt.err (!%p1485_p4)
}
 0x282   :  { %s1489_s24 = scalar_lea.hbm %s2632_s3, 1024 }
 0x283   :  { %p1490_p5 = scmp.ne.s32.totalorder %s2632_s3, %s1489_s24  ;;  %p1493_p6 = scmp.lt.u32.totalorder %s1489_s24, %s2632_s3 }
 0x285   :  { %p1495_p7 = pnand %p1493_p6, %p1490_p5 }
 0x287   :  { %1498 = shalt.err (!%p1495_p7)
}
 0x288   :  { %s1529_s1 = smov 64   ;;  %s1530_s28 = smov 4   ;;  %1208 = vst.msk [vmem:[#allocation4 + $0x3c] sm:$0xf] %vm1120_vm15, %v1316_v6 }
 0x289   :  { %1220 = dma.vmem_to_hbm [thread:$0]  %s1215_s6, 1024, %s2632_s3, [#allocation3], %s1529_s1, %s1529_s1, %s1530_s28  }
 0x28a   :  { %s1499_s8 = scalar_lea.vmem %s2597_s20, 1024  ;;  %p1504_p9 = scmp.lt.s32.totalorder %s2597_s20, %s2597_s20 }
 0x28b   :  { %p1500_p8 = scmp.ne.s32.totalorder %s2597_s20, %s1499_s8  ;;  %p1505_p10 = scmp.lt.s32.totalorder %s1499_s8, %s1499_s8 }
 0x28d   :  { %p1506_p11 = por %p1505_p10, %p1504_p9 }
 0x28f   :  { %p1507_p12 = pnand %p1506_p11, %p1500_p8 }
 0x291   :  { %1510 = shalt.err (!%p1507_p12)
}
 0x292   :  { %s1511_s7 = scalar_lea.hbm %s2633_s4, 1024 }
 0x293   :  { %p1512_p13 = scmp.ne.s32.totalorder %s2633_s4, %s1511_s7  ;;  %p1515_p0 = scmp.lt.u32.totalorder %s1511_s7, %s2633_s4 }
 0x295   :  { %p1517_p1 = pnand %p1515_p0, %p1512_p13 }
 0x297   :  { %1520 = shalt.err (!%p1517_p1)
}
 0x298   :  { %1232 = dma.vmem_to_hbm [thread:$0]  %s2597_s20, 1024, %s2633_s4, [#allocation5], %s1529_s1, %s1529_s1, %s1530_s28  }
 0x299   :  { %1521 = dma.done.wait [#allocation3], 1024  }
 0x29a   :  { %1522 = vsyncadd [#allocation3], 4294966272 }
 0x29b   :  { %1523 = dma.done.wait [#allocation5], 1024  }
 0x29c   :  { %1524 = vsyncadd [#allocation5], 4294966272 }
 0x29d   :  { %1251 = vsyncpa [#allocation3], 1 }
 0x29e   :  { %1252 = vsyncpa [#allocation5], 1 }

</bundles_post_ra>
